<compile_context>
chip_gen: v7x
topology: tpu7x:2x2x1
jax: 0.10.0
libtpu: 0.0.40
codegen_flags: <defaults>
</compile_context>

<pallas_src>
import jax
import jax.numpy as jnp
import numpy as np
from jax.experimental import pallas as pl
from jax.experimental.pallas import tpu as pltpu

# ----------------------------- module config ---------------------------------
DIM = 32                      # channels C
WINDOW = 4                    # window size (4, 4)
N = WINDOW * WINDOW           # tokens per window = 16
NUM_HEADS = 4
HEAD_DIM = DIM // NUM_HEADS   # 8 (== sublane tile -> aligned slices)
NUM_WINDOWS = 8               # B_ = num_windows * batch for the example input
L = NUM_WINDOWS * N           # 128 tokens total (== MXU / lane width)
SCALE = HEAD_DIM ** (-0.5)
NEG_INF = -1e30               # finite large-negative for cross-window masking


def relative_position_index(ws):
    coords = jnp.stack(jnp.meshgrid(jnp.arange(ws), jnp.arange(ws), indexing="ij"))
    flat = coords.reshape(2, -1)
    rel = flat[:, :, None] - flat[:, None, :]              # (2, N, N)
    rel = rel.transpose(1, 2, 0)
    rel = rel.at[:, :, 0].add(ws - 1)
    rel = rel.at[:, :, 1].add(ws - 1)
    rel = rel.at[:, :, 0].multiply(2 * ws - 1)
    return rel.sum(-1).astype(jnp.int32)                   # (N, N)


# ----------------------------- Pallas kernel ----------------------------------
def _wmsa_kernel(x_ref, xT_ref, qkvw_ref, qkvb_ref, wkT_ref, bk_ref,
                 projw_ref, projb_ref, bias_ref, out_ref):
    f32, bf16 = jnp.float32, jnp.bfloat16

    # ---- QKV projection for all tokens: one full-height 128-row MXU matmul.
    #      Q columns of W / b are pre-scaled by head_dim**-0.5 at init time.
    x = x_ref[...]                                                   # (L, C) f32
    qkv = jnp.dot(x.astype(bf16), qkvw_ref[...].astype(bf16),
                  preferred_element_type=f32) + qkvb_ref[...]        # (L, 3C) f32
    Lk = x.shape[0]

    # ---- K^T for the attention core without any in-loop transposes:
    #      KT = Wk^T @ x^T + bk  -> (C, L); per-head slice is sublane-aligned.
    kT = jnp.dot(wkT_ref[...].astype(bf16), xT_ref[...].astype(bf16),
                 preferred_element_type=f32) + bk_ref[...]           # (C, L) f32

    bias = bias_ref[...]                      # (nH, L, L) block-diag bias, f32
    projw = projw_ref[...]                    # (C, C)

    # projection bias folded into the accumulator init (saves a (L,C) VPU add)
    acc = jnp.broadcast_to(projb_ref[...], (Lk, DIM)).astype(f32)

    for h in range(NUM_HEADS):                # static 4-iteration head unroll
        lo = h * HEAD_DIM
        q_h = qkv[:, lo:lo + HEAD_DIM]                               # (L, Hd), pre-scaled
        kT_h = kT[lo:lo + HEAD_DIM, :]                               # (Hd, L), sublane slice
        v_h = qkv[:, 2 * DIM + lo:2 * DIM + lo + HEAD_DIM]           # (L, Hd)

        # one 128-row MXU push per head; cross-window logits killed by the bias
        logits = jnp.dot(q_h.astype(bf16), kT_h.astype(bf16),
                         preferred_element_type=f32) + bias[h]       # (L, L) f32
        m = jnp.max(logits, axis=-1, keepdims=True)
        e = jnp.exp(logits - m)                 # off-block: exp(~-1e30) == 0.0
        prob = e * pl.reciprocal(jnp.sum(e, axis=-1, keepdims=True), approx=True)

        o_h = jnp.dot(prob.astype(bf16), v_h.astype(bf16),
                      preferred_element_type=f32)                    # (L, Hd)

        # concat_h(o_h) @ W  ==  sum_h o_h @ W[h*Hd:(h+1)*Hd, :]
        # (row slices of proj_w are sublane-tile aligned: offsets 0/8/16/24)
        # TODO(synk): on v7x this accumulation could use MRB in-place accumulate
        # via pltpu.matmul_push_rhs/acc_lhs/pop instead of vreg adds.
        acc = acc + jnp.dot(o_h.astype(bf16),
                            projw[lo:lo + HEAD_DIM, :].astype(bf16),
                            preferred_element_type=f32)

    # merged output slab: lanes [0:C] = proj output, lanes [C:2C] = keys (unscaled)
    out_ref[:, 0:DIM] = acc
    out_ref[:, DIM:2 * DIM] = qkv[:, DIM:2 * DIM]


# ----------------------------- Pallas wrapper ---------------------------------
def window_attention_pallas(x, p):
    """x: (B_, N, C) -> (out (B_, N, C), k (B_, nH, N, Hd)) — WindowAttention_One."""
    B_, Nn, C = x.shape
    Ltot = B_ * Nn                                          # 128 tokens total

    x2d = x.reshape(Ltot, C)
    xT = x2d.T                                              # (C, L) — tiny XLA transpose

    merged = pl.pallas_call(
        _wmsa_kernel,
        out_shape=jax.ShapeDtypeStruct((Ltot, 2 * C), jnp.float32),
        grid=(1,),        # whole problem fits one step; add a leading "parallel"
                          # window-block axis here if B_ grows (v7x has 2 TCs)
        in_specs=[
            pl.BlockSpec((Ltot, C), lambda i: (0, 0)),                 # x tokens
            pl.BlockSpec((C, Ltot), lambda i: (0, 0)),                 # x^T
            pl.BlockSpec((C, 3 * C), lambda i: (0, 0)),                # qkv W (Q pre-scaled)
            pl.BlockSpec((1, 3 * C), lambda i: (0, 0)),                # qkv b (Q pre-scaled)
            pl.BlockSpec((C, C), lambda i: (0, 0)),                    # Wk^T
            pl.BlockSpec((C, 1), lambda i: (0, 0)),                    # bk column
            pl.BlockSpec((C, C), lambda i: (0, 0)),                    # proj W
            pl.BlockSpec((1, C), lambda i: (0, 0)),                    # proj b
            pl.BlockSpec((NUM_HEADS, Ltot, Ltot), lambda i: (0, 0, 0)),  # block-diag bias
        ],
        out_specs=pl.BlockSpec((Ltot, 2 * C), lambda i: (0, 0)),
        compiler_params=pltpu.CompilerParams(dimension_semantics=("arbitrary",)),
    )(x2d, xT, p["qkv_w_s"], p["qkv_b_s"], p["wk_T"], p["bk_col"],
      p["proj_w"], p["proj_b"], p["bias_bd"])

    out = merged[:, :C].reshape(B_, Nn, C)
    # keys stored head-contiguous per token; re-layout to (B_, nH, N, Hd) (metadata ops)
    k = merged[:, C:].reshape(B_, Nn, NUM_HEADS, HEAD_DIM).transpose(0, 2, 1, 3)
    return out, k


# ----------------------------- params & reference -----------------------------
def init_params(key):
    ks = jax.random.split(key, 5)
    std = 0.02
    rel_index = relative_position_index(WINDOW)
    rel_table = std * jax.random.normal(
        ks[4], ((2 * WINDOW - 1) ** 2, NUM_HEADS), jnp.float32)
    rel_bias = (rel_table[rel_index.reshape(-1)]
                .reshape(N, N, NUM_HEADS).transpose(2, 0, 1))         # (nH, N, N)

    qkv_w = std * jax.random.normal(ks[0], (DIM, 3 * DIM), jnp.float32)
    qkv_b = std * jax.random.normal(ks[1], (1, 3 * DIM), jnp.float32)
    proj_w = std * jax.random.normal(ks[2], (DIM, DIM), jnp.float32)
    proj_b = std * jax.random.normal(ks[3], (1, DIM), jnp.float32)

    # ---- kernel-side precomputes (hoisted out of the forward path) ----------
    # (1) fold head_dim**-0.5 into the Q columns of the QKV projection
    col_scale = jnp.concatenate([jnp.full((DIM,), SCALE, jnp.float32),
                                 jnp.ones((2 * DIM,), jnp.float32)])
    qkv_w_s = qkv_w * col_scale[None, :]
    qkv_b_s = qkv_b * col_scale[None, :]
    # (2) pre-transposed K projection (KT = Wk^T @ x^T, no in-kernel transposes)
    wk_T = qkv_w[:, DIM:2 * DIM].T                                    # (C, C)
    bk_col = qkv_b[:, DIM:2 * DIM].reshape(DIM, 1)                    # (C, 1)
    # (3) block-diagonal-over-windows relative-position bias with -1e30 off-block
    blk = jnp.kron(jnp.eye(NUM_WINDOWS, dtype=jnp.float32),
                   jnp.ones((N, N), jnp.float32))                     # (L, L)
    bias_bd = jnp.where(blk[None, :, :] > 0.5,
                        jnp.tile(rel_bias, (1, NUM_WINDOWS, NUM_WINDOWS)),
                        jnp.float32(NEG_INF))                         # (nH, L, L)

    return {
        "qkv_w": qkv_w, "qkv_b": qkv_b, "proj_w": proj_w, "proj_b": proj_b,
        "rel_table": rel_table, "rel_index": rel_index,
        "qkv_w_s": qkv_w_s, "qkv_b_s": qkv_b_s,
        "wk_T": wk_T, "bk_col": bk_col, "bias_bd": bias_bd,
    }


def reference_forward(x, p):
    """Pure-JAX mirror of WindowAttention_One.forward(x, mask=None)."""
    B_, Nn, C = x.shape
    qkv = (x @ p["qkv_w"] + p["qkv_b"]).reshape(B_, Nn, 3, NUM_HEADS, HEAD_DIM)
    qkv = qkv.transpose(2, 0, 3, 1, 4)
    q, k, v = qkv[0] * SCALE, qkv[1], qkv[2]
    attn = jnp.einsum("bhnd,bhmd->bhnm", q, k)
    rel_bias = (p["rel_table"][p["rel_index"].reshape(-1)]
                .reshape(Nn, Nn, NUM_HEADS).transpose(2, 0, 1))
    attn = jax.nn.softmax(attn + rel_bias[None], axis=-1)
    o = jnp.einsum("bhnm,bhmd->bhnd", attn, v).transpose(0, 2, 1, 3).reshape(B_, Nn, C)
    o = o @ p["proj_w"] + p["proj_b"]
    return o, k


# ----------------------------- main -------------------------------------------
if __name__ == "__main__":
    key = jax.random.PRNGKey(0)
    kx, kp = jax.random.split(key)
    params = init_params(kp)
    # x: (num_windows * B, N, C) = (8, 16, 32) — e.g. B=2 on an 8x8 map, window 4
    x = jax.random.normal(kx, (NUM_WINDOWS, N, DIM), jnp.float32)

    fwd = jax.jit(window_attention_pallas)
    out, attn_k = fwd(x, params)
    jax.block_until_ready((out, attn_k))

    assert out.shape == (NUM_WINDOWS, N, DIM)
    assert attn_k.shape == (NUM_WINDOWS, NUM_HEADS, N, HEAD_DIM)

    ref_out, ref_k = reference_forward(x, params)
    np.testing.assert_allclose(np.asarray(out), np.asarray(ref_out), rtol=2e-2, atol=2e-2)
    np.testing.assert_allclose(np.asarray(attn_k), np.asarray(ref_k), rtol=2e-2, atol=2e-2)

    print("KERNEL_OK")
</pallas_src>

<mosaic_0001>
module attributes {stable_mosaic.version = 11 : i64} {
  func.func @_wmsa_kernel(%arg0: i32, %arg1: memref<128x32xf32, #tpu.memory_space<vmem>>, %arg2: memref<32x128xf32, #tpu.memory_space<vmem>>, %arg3: memref<32x96xf32, #tpu.memory_space<vmem>>, %arg4: memref<1x96xf32, #tpu.memory_space<vmem>>, %arg5: memref<32x32xf32, #tpu.memory_space<vmem>>, %arg6: memref<32x1xf32, #tpu.memory_space<vmem>>, %arg7: memref<32x32xf32, #tpu.memory_space<vmem>>, %arg8: memref<1x32xf32, #tpu.memory_space<vmem>>, %arg9: memref<4x128x128xf32, #tpu.memory_space<vmem>>, %arg10: memref<128x64xf32, #tpu.memory_space<vmem>>) attributes {dimension_semantics = [#tpu.dimension_semantics<arbitrary>], iteration_bounds = array<i64: 1>, scalar_prefetch = 0 : i64, scratch_operands = 0 : i64, tpu.core_type = #tpu.core_type<tc>, window_params = [{pipeline_mode = #tpu.pipeline_mode<synchronous>, transform_indices = @transform_0, window_bounds = array<i64: 128, 32>}, {pipeline_mode = #tpu.pipeline_mode<synchronous>, transform_indices = @transform_1, window_bounds = array<i64: 32, 128>}, {pipeline_mode = #tpu.pipeline_mode<synchronous>, transform_indices = @transform_2, window_bounds = array<i64: 32, 96>}, {pipeline_mode = #tpu.pipeline_mode<synchronous>, transform_indices = @transform_3, window_bounds = array<i64: 1, 96>}, {pipeline_mode = #tpu.pipeline_mode<synchronous>, transform_indices = @transform_4, window_bounds = array<i64: 32, 32>}, {pipeline_mode = #tpu.pipeline_mode<synchronous>, transform_indices = @transform_5, window_bounds = array<i64: 32, 1>}, {pipeline_mode = #tpu.pipeline_mode<synchronous>, transform_indices = @transform_6, window_bounds = array<i64: 32, 32>}, {pipeline_mode = #tpu.pipeline_mode<synchronous>, transform_indices = @transform_7, window_bounds = array<i64: 1, 32>}, {pipeline_mode = #tpu.pipeline_mode<synchronous>, transform_indices = @transform_8, window_bounds = array<i64: 4, 128, 128>}, {pipeline_mode = #tpu.pipeline_mode<synchronous>, transform_indices = @transform_9, window_bounds = array<i64: 128, 64>}]} {
    %c0 = arith.constant 0 : index
    %c0_0 = arith.constant 0 : index
    %0 = vector.load %arg1[%c0, %c0_0] : memref<128x32xf32, #tpu.memory_space<vmem>>, vector<128x32xf32>
    %1 = arith.truncf %0 : vector<128x32xf32> to vector<128x32xbf16>
    %c0_1 = arith.constant 0 : index
    %c0_2 = arith.constant 0 : index
    %2 = vector.load %arg3[%c0_1, %c0_2] : memref<32x96xf32, #tpu.memory_space<vmem>>, vector<32x96xf32>
    %3 = arith.truncf %2 : vector<32x96xf32> to vector<32x96xbf16>
    %cst = arith.constant dense<0.000000e+00> : vector<128x96xf32>
    %4 = tpu.matmul %1, %3, %cst {dimension_numbers = #tpu.dot_dimension_numbers<[1], [0], [0], [1], [0, 0, 1, 1], [], []>} : vector<128x32xbf16>, vector<32x96xbf16>, vector<128x96xf32> -> vector<128x96xf32>
    %c0_3 = arith.constant 0 : index
    %c0_4 = arith.constant 0 : index
    %5 = vector.load %arg4[%c0_3, %c0_4] : memref<1x96xf32, #tpu.memory_space<vmem>>, vector<1x96xf32>
    %6 = vector.broadcast %5 : vector<1x96xf32> to vector<128x96xf32>
    %7 = arith.addf %4, %6 : vector<128x96xf32>
    %c0_5 = arith.constant 0 : index
    %c0_6 = arith.constant 0 : index
    %8 = vector.load %arg5[%c0_5, %c0_6] : memref<32x32xf32, #tpu.memory_space<vmem>>, vector<32x32xf32>
    %9 = arith.truncf %8 : vector<32x32xf32> to vector<32x32xbf16>
    %c0_7 = arith.constant 0 : index
    %c0_8 = arith.constant 0 : index
    %10 = vector.load %arg2[%c0_7, %c0_8] : memref<32x128xf32, #tpu.memory_space<vmem>>, vector<32x128xf32>
    %11 = arith.truncf %10 : vector<32x128xf32> to vector<32x128xbf16>
    %cst_9 = arith.constant dense<0.000000e+00> : vector<32x128xf32>
    %12 = tpu.matmul %9, %11, %cst_9 {dimension_numbers = #tpu.dot_dimension_numbers<[1], [0], [0], [1], [0, 0, 1, 1], [], []>} : vector<32x32xbf16>, vector<32x128xbf16>, vector<32x128xf32> -> vector<32x128xf32>
    %c0_10 = arith.constant 0 : index
    %c0_11 = arith.constant 0 : index
    %13 = vector.load %arg6[%c0_10, %c0_11] : memref<32x1xf32, #tpu.memory_space<vmem>>, vector<32x1xf32>
    %14 = vector.broadcast %13 : vector<32x1xf32> to vector<32x128xf32>
    %15 = arith.addf %12, %14 : vector<32x128xf32>
    %c0_12 = arith.constant 0 : index
    %c0_13 = arith.constant 0 : index
    %c0_14 = arith.constant 0 : index
    %16 = vector.load %arg9[%c0_12, %c0_13, %c0_14] : memref<4x128x128xf32, #tpu.memory_space<vmem>>, vector<4x128x128xf32>
    %c0_15 = arith.constant 0 : index
    %c0_16 = arith.constant 0 : index
    %17 = vector.load %arg7[%c0_15, %c0_16] : memref<32x32xf32, #tpu.memory_space<vmem>>, vector<32x32xf32>
    %c0_17 = arith.constant 0 : index
    %c0_18 = arith.constant 0 : index
    %18 = vector.load %arg8[%c0_17, %c0_18] : memref<1x32xf32, #tpu.memory_space<vmem>>, vector<1x32xf32>
    %19 = vector.shape_cast %18 : vector<1x32xf32> to vector<1x32xf32>
    %20 = vector.broadcast %19 : vector<1x32xf32> to vector<128x32xf32>
    %21 = vector.extract_strided_slice %7 {offsets = [0, 0], sizes = [128, 8], strides = [1, 1]} : vector<128x96xf32> to vector<128x8xf32>
    %22 = vector.extract_strided_slice %15 {offsets = [0, 0], sizes = [8, 128], strides = [1, 1]} : vector<32x128xf32> to vector<8x128xf32>
    %23 = vector.extract_strided_slice %7 {offsets = [0, 64], sizes = [128, 8], strides = [1, 1]} : vector<128x96xf32> to vector<128x8xf32>
    %24 = arith.truncf %21 : vector<128x8xf32> to vector<128x8xbf16>
    %25 = arith.truncf %22 : vector<8x128xf32> to vector<8x128xbf16>
    %cst_19 = arith.constant dense<0.000000e+00> : vector<128x128xf32>
    %26 = tpu.matmul %24, %25, %cst_19 {dimension_numbers = #tpu.dot_dimension_numbers<[1], [0], [0], [1], [0, 0, 1, 1], [], []>} : vector<128x8xbf16>, vector<8x128xbf16>, vector<128x128xf32> -> vector<128x128xf32>
    %27 = vector.extract_strided_slice %16 {offsets = [0, 0, 0], sizes = [1, 128, 128], strides = [1, 1, 1]} : vector<4x128x128xf32> to vector<1x128x128xf32>
    %28 = vector.shape_cast %27 : vector<1x128x128xf32> to vector<128x128xf32>
    %29 = arith.addf %26, %28 : vector<128x128xf32>
    %cst_20 = arith.constant dense<0xFF800000> : vector<128xf32>
    %30 = vector.multi_reduction <maximumf>, %29, %cst_20 [1] : vector<128x128xf32> to vector<128xf32>
    %31 = vector.shape_cast %30 : vector<128xf32> to vector<128x1xf32>
    %32 = vector.broadcast %31 : vector<128x1xf32> to vector<128x128xf32>
    %33 = arith.subf %29, %32 : vector<128x128xf32>
    %34 = math.exp %33 : vector<128x128xf32>
    %cst_21 = arith.constant dense<0.000000e+00> : vector<128xf32>
    %35 = vector.multi_reduction <add>, %34, %cst_21 [1] : vector<128x128xf32> to vector<128xf32>
    %36 = vector.shape_cast %35 : vector<128xf32> to vector<128x1xf32>
    %37 = tpu.reciprocal %36 {approx = true} : vector<128x1xf32> -> vector<128x1xf32>
    %38 = vector.broadcast %37 : vector<128x1xf32> to vector<128x128xf32>
    %39 = arith.mulf %34, %38 : vector<128x128xf32>
    %40 = arith.truncf %39 : vector<128x128xf32> to vector<128x128xbf16>
    %41 = arith.truncf %23 : vector<128x8xf32> to vector<128x8xbf16>
    %cst_22 = arith.constant dense<0.000000e+00> : vector<128x8xf32>
    %42 = tpu.matmul %40, %41, %cst_22 {dimension_numbers = #tpu.dot_dimension_numbers<[1], [0], [0], [1], [0, 0, 1, 1], [], []>} : vector<128x128xbf16>, vector<128x8xbf16>, vector<128x8xf32> -> vector<128x8xf32>
    %43 = arith.truncf %42 : vector<128x8xf32> to vector<128x8xbf16>
    %44 = vector.extract_strided_slice %17 {offsets = [0, 0], sizes = [8, 32], strides = [1, 1]} : vector<32x32xf32> to vector<8x32xf32>
    %45 = arith.truncf %44 : vector<8x32xf32> to vector<8x32xbf16>
    %cst_23 = arith.constant dense<0.000000e+00> : vector<128x32xf32>
    %46 = tpu.matmul %43, %45, %cst_23 {dimension_numbers = #tpu.dot_dimension_numbers<[1], [0], [0], [1], [0, 0, 1, 1], [], []>} : vector<128x8xbf16>, vector<8x32xbf16>, vector<128x32xf32> -> vector<128x32xf32>
    %47 = arith.addf %20, %46 : vector<128x32xf32>
    %48 = vector.extract_strided_slice %7 {offsets = [0, 8], sizes = [128, 8], strides = [1, 1]} : vector<128x96xf32> to vector<128x8xf32>
    %49 = vector.extract_strided_slice %15 {offsets = [8, 0], sizes = [8, 128], strides = [1, 1]} : vector<32x128xf32> to vector<8x128xf32>
    %50 = vector.extract_strided_slice %7 {offsets = [0, 72], sizes = [128, 8], strides = [1, 1]} : vector<128x96xf32> to vector<128x8xf32>
    %51 = arith.truncf %48 : vector<128x8xf32> to vector<128x8xbf16>
    %52 = arith.truncf %49 : vector<8x128xf32> to vector<8x128xbf16>
    %cst_24 = arith.constant dense<0.000000e+00> : vector<128x128xf32>
    %53 = tpu.matmul %51, %52, %cst_24 {dimension_numbers = #tpu.dot_dimension_numbers<[1], [0], [0], [1], [0, 0, 1, 1], [], []>} : vector<128x8xbf16>, vector<8x128xbf16>, vector<128x128xf32> -> vector<128x128xf32>
    %54 = vector.extract_strided_slice %16 {offsets = [1, 0, 0], sizes = [1, 128, 128], strides = [1, 1, 1]} : vector<4x128x128xf32> to vector<1x128x128xf32>
    %55 = vector.shape_cast %54 : vector<1x128x128xf32> to vector<128x128xf32>
    %56 = arith.addf %53, %55 : vector<128x128xf32>
    %cst_25 = arith.constant dense<0xFF800000> : vector<128xf32>
    %57 = vector.multi_reduction <maximumf>, %56, %cst_25 [1] : vector<128x128xf32> to vector<128xf32>
    %58 = vector.shape_cast %57 : vector<128xf32> to vector<128x1xf32>
    %59 = vector.broadcast %58 : vector<128x1xf32> to vector<128x128xf32>
    %60 = arith.subf %56, %59 : vector<128x128xf32>
    %61 = math.exp %60 : vector<128x128xf32>
    %cst_26 = arith.constant dense<0.000000e+00> : vector<128xf32>
    %62 = vector.multi_reduction <add>, %61, %cst_26 [1] : vector<128x128xf32> to vector<128xf32>
    %63 = vector.shape_cast %62 : vector<128xf32> to vector<128x1xf32>
    %64 = tpu.reciprocal %63 {approx = true} : vector<128x1xf32> -> vector<128x1xf32>
    %65 = vector.broadcast %64 : vector<128x1xf32> to vector<128x128xf32>
    %66 = arith.mulf %61, %65 : vector<128x128xf32>
    %67 = arith.truncf %66 : vector<128x128xf32> to vector<128x128xbf16>
    %68 = arith.truncf %50 : vector<128x8xf32> to vector<128x8xbf16>
    %cst_27 = arith.constant dense<0.000000e+00> : vector<128x8xf32>
    %69 = tpu.matmul %67, %68, %cst_27 {dimension_numbers = #tpu.dot_dimension_numbers<[1], [0], [0], [1], [0, 0, 1, 1], [], []>} : vector<128x128xbf16>, vector<128x8xbf16>, vector<128x8xf32> -> vector<128x8xf32>
    %70 = arith.truncf %69 : vector<128x8xf32> to vector<128x8xbf16>
    %71 = vector.extract_strided_slice %17 {offsets = [8, 0], sizes = [8, 32], strides = [1, 1]} : vector<32x32xf32> to vector<8x32xf32>
    %72 = arith.truncf %71 : vector<8x32xf32> to vector<8x32xbf16>
    %cst_28 = arith.constant dense<0.000000e+00> : vector<128x32xf32>
    %73 = tpu.matmul %70, %72, %cst_28 {dimension_numbers = #tpu.dot_dimension_numbers<[1], [0], [0], [1], [0, 0, 1, 1], [], []>} : vector<128x8xbf16>, vector<8x32xbf16>, vector<128x32xf32> -> vector<128x32xf32>
    %74 = arith.addf %47, %73 : vector<128x32xf32>
    %75 = vector.extract_strided_slice %7 {offsets = [0, 16], sizes = [128, 8], strides = [1, 1]} : vector<128x96xf32> to vector<128x8xf32>
    %76 = vector.extract_strided_slice %15 {offsets = [16, 0], sizes = [8, 128], strides = [1, 1]} : vector<32x128xf32> to vector<8x128xf32>
    %77 = vector.extract_strided_slice %7 {offsets = [0, 80], sizes = [128, 8], strides = [1, 1]} : vector<128x96xf32> to vector<128x8xf32>
    %78 = arith.truncf %75 : vector<128x8xf32> to vector<128x8xbf16>
    %79 = arith.truncf %76 : vector<8x128xf32> to vector<8x128xbf16>
    %cst_29 = arith.constant dense<0.000000e+00> : vector<128x128xf32>
    %80 = tpu.matmul %78, %79, %cst_29 {dimension_numbers = #tpu.dot_dimension_numbers<[1], [0], [0], [1], [0, 0, 1, 1], [], []>} : vector<128x8xbf16>, vector<8x128xbf16>, vector<128x128xf32> -> vector<128x128xf32>
    %81 = vector.extract_strided_slice %16 {offsets = [2, 0, 0], sizes = [1, 128, 128], strides = [1, 1, 1]} : vector<4x128x128xf32> to vector<1x128x128xf32>
    %82 = vector.shape_cast %81 : vector<1x128x128xf32> to vector<128x128xf32>
    %83 = arith.addf %80, %82 : vector<128x128xf32>
    %cst_30 = arith.constant dense<0xFF800000> : vector<128xf32>
    %84 = vector.multi_reduction <maximumf>, %83, %cst_30 [1] : vector<128x128xf32> to vector<128xf32>
    %85 = vector.shape_cast %84 : vector<128xf32> to vector<128x1xf32>
    %86 = vector.broadcast %85 : vector<128x1xf32> to vector<128x128xf32>
    %87 = arith.subf %83, %86 : vector<128x128xf32>
    %88 = math.exp %87 : vector<128x128xf32>
    %cst_31 = arith.constant dense<0.000000e+00> : vector<128xf32>
    %89 = vector.multi_reduction <add>, %88, %cst_31 [1] : vector<128x128xf32> to vector<128xf32>
    %90 = vector.shape_cast %89 : vector<128xf32> to vector<128x1xf32>
    %91 = tpu.reciprocal %90 {approx = true} : vector<128x1xf32> -> vector<128x1xf32>
    %92 = vector.broadcast %91 : vector<128x1xf32> to vector<128x128xf32>
    %93 = arith.mulf %88, %92 : vector<128x128xf32>
    %94 = arith.truncf %93 : vector<128x128xf32> to vector<128x128xbf16>
    %95 = arith.truncf %77 : vector<128x8xf32> to vector<128x8xbf16>
    %cst_32 = arith.constant dense<0.000000e+00> : vector<128x8xf32>
    %96 = tpu.matmul %94, %95, %cst_32 {dimension_numbers = #tpu.dot_dimension_numbers<[1], [0], [0], [1], [0, 0, 1, 1], [], []>} : vector<128x128xbf16>, vector<128x8xbf16>, vector<128x8xf32> -> vector<128x8xf32>
    %97 = arith.truncf %96 : vector<128x8xf32> to vector<128x8xbf16>
    %98 = vector.extract_strided_slice %17 {offsets = [16, 0], sizes = [8, 32], strides = [1, 1]} : vector<32x32xf32> to vector<8x32xf32>
    %99 = arith.truncf %98 : vector<8x32xf32> to vector<8x32xbf16>
    %cst_33 = arith.constant dense<0.000000e+00> : vector<128x32xf32>
    %100 = tpu.matmul %97, %99, %cst_33 {dimension_numbers = #tpu.dot_dimension_numbers<[1], [0], [0], [1], [0, 0, 1, 1], [], []>} : vector<128x8xbf16>, vector<8x32xbf16>, vector<128x32xf32> -> vector<128x32xf32>
    %101 = arith.addf %74, %100 : vector<128x32xf32>
    %102 = vector.extract_strided_slice %7 {offsets = [0, 24], sizes = [128, 8], strides = [1, 1]} : vector<128x96xf32> to vector<128x8xf32>
    %103 = vector.extract_strided_slice %15 {offsets = [24, 0], sizes = [8, 128], strides = [1, 1]} : vector<32x128xf32> to vector<8x128xf32>
    %104 = vector.extract_strided_slice %7 {offsets = [0, 88], sizes = [128, 8], strides = [1, 1]} : vector<128x96xf32> to vector<128x8xf32>
    %105 = arith.truncf %102 : vector<128x8xf32> to vector<128x8xbf16>
    %106 = arith.truncf %103 : vector<8x128xf32> to vector<8x128xbf16>
    %cst_34 = arith.constant dense<0.000000e+00> : vector<128x128xf32>
    %107 = tpu.matmul %105, %106, %cst_34 {dimension_numbers = #tpu.dot_dimension_numbers<[1], [0], [0], [1], [0, 0, 1, 1], [], []>} : vector<128x8xbf16>, vector<8x128xbf16>, vector<128x128xf32> -> vector<128x128xf32>
    %108 = vector.extract_strided_slice %16 {offsets = [3, 0, 0], sizes = [1, 128, 128], strides = [1, 1, 1]} : vector<4x128x128xf32> to vector<1x128x128xf32>
    %109 = vector.shape_cast %108 : vector<1x128x128xf32> to vector<128x128xf32>
    %110 = arith.addf %107, %109 : vector<128x128xf32>
    %cst_35 = arith.constant dense<0xFF800000> : vector<128xf32>
    %111 = vector.multi_reduction <maximumf>, %110, %cst_35 [1] : vector<128x128xf32> to vector<128xf32>
    %112 = vector.shape_cast %111 : vector<128xf32> to vector<128x1xf32>
    %113 = vector.broadcast %112 : vector<128x1xf32> to vector<128x128xf32>
    %114 = arith.subf %110, %113 : vector<128x128xf32>
    %115 = math.exp %114 : vector<128x128xf32>
    %cst_36 = arith.constant dense<0.000000e+00> : vector<128xf32>
    %116 = vector.multi_reduction <add>, %115, %cst_36 [1] : vector<128x128xf32> to vector<128xf32>
    %117 = vector.shape_cast %116 : vector<128xf32> to vector<128x1xf32>
    %118 = tpu.reciprocal %117 {approx = true} : vector<128x1xf32> -> vector<128x1xf32>
    %119 = vector.broadcast %118 : vector<128x1xf32> to vector<128x128xf32>
    %120 = arith.mulf %115, %119 : vector<128x128xf32>
    %121 = arith.truncf %120 : vector<128x128xf32> to vector<128x128xbf16>
    %122 = arith.truncf %104 : vector<128x8xf32> to vector<128x8xbf16>
    %cst_37 = arith.constant dense<0.000000e+00> : vector<128x8xf32>
    %123 = tpu.matmul %121, %122, %cst_37 {dimension_numbers = #tpu.dot_dimension_numbers<[1], [0], [0], [1], [0, 0, 1, 1], [], []>} : vector<128x128xbf16>, vector<128x8xbf16>, vector<128x8xf32> -> vector<128x8xf32>
    %124 = arith.truncf %123 : vector<128x8xf32> to vector<128x8xbf16>
    %125 = vector.extract_strided_slice %17 {offsets = [24, 0], sizes = [8, 32], strides = [1, 1]} : vector<32x32xf32> to vector<8x32xf32>
    %126 = arith.truncf %125 : vector<8x32xf32> to vector<8x32xbf16>
    %cst_38 = arith.constant dense<0.000000e+00> : vector<128x32xf32>
    %127 = tpu.matmul %124, %126, %cst_38 {dimension_numbers = #tpu.dot_dimension_numbers<[1], [0], [0], [1], [0, 0, 1, 1], [], []>} : vector<128x8xbf16>, vector<8x32xbf16>, vector<128x32xf32> -> vector<128x32xf32>
    %128 = arith.addf %101, %127 : vector<128x32xf32>
    %c0_39 = arith.constant 0 : index
    %c0_40 = arith.constant 0 : index
    %129 = vector.load %arg10[%c0_39, %c0_40] : memref<128x64xf32, #tpu.memory_space<vmem>>, vector<128x32xf32>
    tpu.vector_store %arg10[%c0_39, %c0_40], %128 {strides = array<i32>} : memref<128x64xf32, #tpu.memory_space<vmem>>, vector<128x32xf32>,
    %130 = vector.extract_strided_slice %7 {offsets = [0, 32], sizes = [128, 32], strides = [1, 1]} : vector<128x96xf32> to vector<128x32xf32>
    %c0_41 = arith.constant 0 : index
    %c32 = arith.constant 32 : index
    %131 = vector.load %arg10[%c0_41, %c32] : memref<128x64xf32, #tpu.memory_space<vmem>>, vector<128x32xf32>
    tpu.vector_store %arg10[%c0_41, %c32], %130 {strides = array<i32>} : memref<128x64xf32, #tpu.memory_space<vmem>>, vector<128x32xf32>,
    return
  }
  func.func @transform_0(%arg0: i32) -> (i32, i32) {
    %c0_i32 = arith.constant 0 : i32
    %c0_i32_0 = arith.constant 0 : i32
    %c0_i32_1 = arith.constant 0 : i32
    return %c0_i32, %c0_i32_0 : i32, i32
  }
  func.func @transform_1(%arg0: i32) -> (i32, i32) {
    %c0_i32 = arith.constant 0 : i32
    %c0_i32_0 = arith.constant 0 : i32
    %c0_i32_1 = arith.constant 0 : i32
    return %c0_i32, %c0_i32_0 : i32, i32
  }
  func.func @transform_2(%arg0: i32) -> (i32, i32) {
    %c0_i32 = arith.constant 0 : i32
    %c0_i32_0 = arith.constant 0 : i32
    %c0_i32_1 = arith.constant 0 : i32
    return %c0_i32, %c0_i32_0 : i32, i32
  }
  func.func @transform_3(%arg0: i32) -> (i32, i32) {
    %c0_i32 = arith.constant 0 : i32
    %c0_i32_0 = arith.constant 0 : i32
    %c0_i32_1 = arith.constant 0 : i32
    return %c0_i32, %c0_i32_0 : i32, i32
  }
  func.func @transform_4(%arg0: i32) -> (i32, i32) {
    %c0_i32 = arith.constant 0 : i32
    %c0_i32_0 = arith.constant 0 : i32
    %c0_i32_1 = arith.constant 0 : i32
    return %c0_i32, %c0_i32_0 : i32, i32
  }
  func.func @transform_5(%arg0: i32) -> (i32, i32) {
    %c0_i32 = arith.constant 0 : i32
    %c0_i32_0 = arith.constant 0 : i32
    %c0_i32_1 = arith.constant 0 : i32
    return %c0_i32, %c0_i32_0 : i32, i32
  }
  func.func @transform_6(%arg0: i32) -> (i32, i32) {
    %c0_i32 = arith.constant 0 : i32
    %c0_i32_0 = arith.constant 0 : i32
    %c0_i32_1 = arith.constant 0 : i32
    return %c0_i32, %c0_i32_0 : i32, i32
  }
  func.func @transform_7(%arg0: i32) -> (i32, i32) {
    %c0_i32 = arith.constant 0 : i32
    %c0_i32_0 = arith.constant 0 : i32
    %c0_i32_1 = arith.constant 0 : i32
    return %c0_i32, %c0_i32_0 : i32, i32
  }
  func.func @transform_8(%arg0: i32) -> (i32, i32, i32) {
    %c0_i32 = arith.constant 0 : i32
    %c0_i32_0 = arith.constant 0 : i32
    %c0_i32_1 = arith.constant 0 : i32
    %c0_i32_2 = arith.constant 0 : i32
    return %c0_i32, %c0_i32_0, %c0_i32_1 : i32, i32, i32
  }
  func.func @transform_9(%arg0: i32) -> (i32, i32) {
    %c0_i32 = arith.constant 0 : i32
    %c0_i32_0 = arith.constant 0 : i32
    %c0_i32_1 = arith.constant 0 : i32
    return %c0_i32, %c0_i32_0 : i32, i32
  }
}

</mosaic_0001>

<bundles_post_ra>
// kernel: window_attention_pallas.1
= control target key start
LH: loop header
LB: loop body
LE: loop exit
PB: predicated region body
PF: predicated region fallthrough
CT: control target
= control target key end

     0   :  { %14 = vsyncpa [#allocation3], 0  ;;  %s4815_s0 = inlined_call_operand.vmem [shape: f32[128,32], index: 0, kind: input, shape index: {}]   ;;  %s4816_s1 = inlined_call_operand.vmem [shape: f32[32,128], index: 1, kind: input, shape index: {}]   ;;  %s4817_s2 = inlined_call_operand.vmem [shape: f32[32,96], index: 2, kind: input, shape index: {}]   ;;  %s4818_s3 = inlined_call_operand.vmem [shape: f32[1,96], index: 3, kind: input, shape index: {}]   ;;  %s4819_s4 = inlined_call_operand.vmem [shape: f32[32,32], index: 4, kind: input, shape index: {}]   ;;  %s4820_s5 = inlined_call_operand.vmem [shape: f32[32,1], index: 5, kind: input, shape index: {}]   ;;  %s4821_s6 = inlined_call_operand.hbm [shape: f32[32,32], index: 6, kind: input, shape index: {}]   ;;  %s4822_s7 = inlined_call_operand.vmem [shape: f32[1,32], index: 7, kind: input, shape index: {}]   ;;  %s4823_s8 = inlined_call_operand.hbm [shape: f32[4,128,128], index: 8, kind: input, shape index: {}]   ;;  %s4824_s9 = inlined_call_operand.vmem [shape: f32[128,64], index: 9, kind: output, shape index: {}]  }
   0x1   :  { %15 = vsyncpa [#allocation5], 0  ;;  %s3610_s30 = smov [#allocation2]   ;;  %s3562_s13 = scalar_lea.hbm %s4821_s6, 512 }
   0x2   :  { %s33_s10 = sshll.u32 %s3610_s30, 4  ;;  %p3563_p0 = scmp.ne.s32.totalorder %s4821_s6, %s3562_s13  ;;  %s34_s10 = int_to_ptr.vmem [resolvable:$true] %s33_s10 }
   0x3   :  { %p3566_p1 = scmp.lt.u32.totalorder %s3562_s13, %s4821_s6 }
   0x5   :  { %p3568_p2 = pnand %p3566_p1, %p3563_p0 }
   0x7   :  { %3571 = shalt.err (!%p3568_p2)
}
   0x8   :  { %s3572_s18 = scalar_lea.vmem %s34_s10, 512  ;;  %p3577_p4 = scmp.lt.s32.totalorder %s34_s10, %s34_s10 }
   0x9   :  { %p3573_p3 = scmp.ne.s32.totalorder %s34_s10, %s3572_s18  ;;  %p3578_p5 = scmp.lt.s32.totalorder %s3572_s18, %s3572_s18 }
   0xb   :  { %p3579_p6 = por %p3578_p5, %p3577_p4 }
   0xd   :  { %p3580_p7 = pnand %p3579_p6, %p3573_p3 }
   0xf   :  { %3583 = shalt.err (!%p3580_p7)
}
  0x10   :  { %s3611_s19 = smov 128   ;;  %s3612_s20 = smov 8  }
  0x11   :  { %39 = dma.hbm_to_vmem [thread:$0]  %s4821_s6, 512, %s34_s10, [#allocation3], %s3611_s19, %s3611_s19, %s3612_s20  }
  0x12   :  { %s3613_s23 = smov [#allocation4]   ;;  %s3584_s27 = scalar_lea.hbm %s4823_s8, 8192 }
  0x13   :  { %s47_s24 = sshll.u32 %s3613_s23, 4  ;;  %p3585_p8 = scmp.ne.s32.totalorder %s4823_s8, %s3584_s27  ;;  %s48_s24 = int_to_ptr.vmem [resolvable:$true] %s47_s24 }
  0x14   :  { %p3588_p9 = scmp.lt.u32.totalorder %s3584_s27, %s4823_s8 }
  0x16   :  { %p3590_p10 = pnand %p3588_p9, %p3585_p8 }
  0x18   :  { %3593 = shalt.err (!%p3590_p10)
}
  0x19   :  { %s3594_s12 = scalar_lea.vmem %s48_s24, 8192  ;;  %p3599_p12 = scmp.lt.s32.totalorder %s48_s24, %s48_s24 }
  0x1a   :  { %p3595_p11 = scmp.ne.s32.totalorder %s48_s24, %s3594_s12  ;;  %p3600_p13 = scmp.lt.s32.totalorder %s3594_s12, %s3594_s12 }
  0x1c   :  { %p3601_p0 = por %p3600_p13, %p3599_p12 }
  0x1e   :  { %p3602_p1 = pnand %p3601_p0, %p3595_p11 }
  0x20   :  { %3605 = shalt.err (!%p3602_p1)
}
  0x21   :  { %53 = dma.hbm_to_vmem [thread:$0]  %s4823_s8, 8192, %s48_s24, [#allocation5], %s3611_s19, %s3611_s19, %s3612_s20  }
  0x22   :  { %3606 = dma.done.wait [#allocation3], 512  }
  0x23   :  { %3607 = vsyncadd [#allocation3], 4294966784 }
  0x24   :  { %3608 = dma.done.wait [#allocation5], 8192  }
  0x25   :  { %3609 = vsyncadd [#allocation5], 4294959104  ;;  %v3614_v0 = vmov 0   ;;  %v85_v1 = vld [vmem:[%s4817_s2] sm:$0xff]  ;;  %v86_v2 = vld [vmem:[%s4817_s2 + $0x8] sm:$0xff]  ;;  %vm98_vm0 = vcmask 261120  }
  0x26   :  { %3305 = vset.pattern.permute.xlu0 %v3614_v0  ;;  %v226_v3 = vld [vmem:[%s4816_s1] sm:$0xff]  ;;  %v89_v4 = vpack.c.bf16 %v86_v2, %v85_v1  ;;  %v227_v5 = vld [vmem:[%s4816_s1 + $0x8] sm:$0xff]  ;;  %v87_v6 = vld [vmem:[%s4817_s2 + $0x10] sm:$0xff]  ;;  %vm420_vm1 = vcmask 1043456   ;;  %vm395_vm2 = vcmask 64512   ;;  %s3616_s22 = smov 120  }
  0x27   :  { %v88_v7 = vld [vmem:[%s4817_s2 + $0x18] sm:$0xff]  ;;  %v230_v8 = vpack.c.bf16 %v227_v5, %v226_v3  ;;  %v228_v10 = vld [vmem:[%s4816_s1 + $0x10] sm:$0xff]  ;;  %v61_v12 = vld [vmem:[%s4815_s0] sm:$0xff]  ;;  %s3617_s23 = smov 56   ;;  %s3619_s26 = smov 48   ;;  %vm2656_vm3 = vcmask 523520  }
  0x28   :  { %v90_v9 = vpack.c.bf16 %v88_v7, %v87_v6  ;;  %v229_v11 = vld [vmem:[%s4816_s1 + $0x18] sm:$0xff]  ;;  %2905 = vmatprep.subr.bf16.mxu0 %v89_v4  ;;  %v62_v14 = vld [vmem:[%s4815_s0 + $0x8] sm:$0xff]  ;;  %v220_v15 = vld [vmem:[%s4819_s4] sm:$0xff]  ;;  %s3620_s27 = smov 104  }
  0x29   :  { %v231_v13 = vpack.c.bf16 %v229_v11, %v228_v10  ;;  %v221_v16 = vld [vmem:[%s4819_s4 + $0x8] sm:$0xff]  ;;  %2925 = vmatprep.subr.bf16.mxu1 %v230_v8  ;;  %2906 = vmatpush3.bf16.msra.mxu0 %v89_v4  ;;  %v77_v17 = vpack.c.bf16 %v62_v14, %v61_v12  ;;  %v63_v19 = vld [vmem:[%s4815_s0 + $0x10] sm:$0xff]  ;;  %v64_v20 = vld [vmem:[%s4815_s0 + $0x18] sm:$0xff] }
  0x2a   :  { %v224_v18 = vpack.c.bf16 %v221_v16, %v220_v15  ;;  %v222_v21 = vld [vmem:[%s4819_s4 + $0x10] sm:$0xff]  ;;  %2926 = vmatpush3.bf16.msra.mxu1 %v230_v8  ;;  %2907 = vmatprep.subr.bf16.mxu0 %v90_v9  ;;  %v223_v22 = vld [vmem:[%s4819_s4 + $0x18] sm:$0xff]  ;;  %v65_v23 = vld [vmem:[%s4815_s0 + $0x20] sm:$0xff]  ;;  %v78_v25 = vpack.c.bf16 %v64_v20, %v63_v19  ;;  %s3618_s4 = smov 112  }
  0x2b   :  { %v66_v24 = vld [vmem:[%s4815_s0 + $0x28] sm:$0xff]  ;;  %2927 = vmatprep.subr.bf16.mxu1 %v231_v13  ;;  %2909 = vmatprep.mubr.msk.bf16.mxu0 %vm98_vm0, %v77_v17  ;;  %v225_v26 = vpack.c.bf16 %v223_v22, %v222_v21  ;;  %v232_v28 = vld [vmem:[%s4820_s5] sm:$0xff]  ;;  %v67_v29 = vld [vmem:[%s4815_s0 + $0x30] sm:$0xff] }
  0x2c   :  { %2929 = vmatprep.mubr.msk.bf16.mxu1 %vm98_vm0, %v224_v18  ;;  %v79_v27 = vpack.c.bf16 %v66_v24, %v65_v23  ;;  %238 = vperm.xlu0 %3305, %v232_v28   ;;  %v68_v30 = vld [vmem:[%s4815_s0 + $0x38] sm:$0xff]  ;;  %v69_v31 = vld [vmem:[%s4815_s0 + $0x40] sm:$0xff]  ;;  %v70_v32 = vld [vmem:[%s4815_s0 + $0x48] sm:$0xff] }
  0x2d   :  { %2908 = vmatpush3.bf16.msra.mxu0 %v90_v9  ;;  %v80_v33 = vpack.c.bf16 %v68_v30, %v67_v29  ;;  %v81_v34 = vpack.c.bf16 %v70_v32, %v69_v31  ;;  %v71_v35 = vld [vmem:[%s4815_s0 + $0x50] sm:$0xff]  ;;  %v72_v36 = vld [vmem:[%s4815_s0 + $0x58] sm:$0xff]  ;;  %v73_v37 = vld [vmem:[%s4815_s0 + $0x60] sm:$0xff] }
  0x2e   :  { %2928 = vmatpush3.bf16.msra.mxu1 %v231_v13  ;;  %v74_v38 = vld [vmem:[%s4815_s0 + $0x68] sm:$0xff]  ;;  %v82_v39 = vpack.c.bf16 %v72_v36, %v71_v35  ;;  %v75_v41 = vld [vmem:[%s4815_s0 + $0x70] sm:$0xff]  ;;  %v76_v42 = vld [vmem:[%s4815_s0 + $0x78] sm:$0xff]  ;;  %s3615_s0 = smov 64  }
  0x2f   :  { %v83_v40 = vpack.c.bf16 %v74_v38, %v73_v37  ;;  %v84_v43 = vpack.c.bf16 %v76_v42, %v75_v41  ;;  %v2679_v44 = vld [vmem:[%s4818_s3] ss:$0 sm:$0xff]  ;;  %v313_v32 = vld [vmem:[#allocation4 + $0x10] sm:$0xff] }
  0x30   :  { %2910 = vmatmul.mubr.msk.bf16.vlgmr.msra.gmra.mrb[0].mxu0 %vm98_vm0, %v78_v25 }
  0x31   :  { %2930 = vmatmul.mubr.msk.bf16.vlgmr.msra.gmra.mrb[0].mxu1 %vm98_vm0, %v225_v26  ;;  %2913 = vmatprep.mubr.msk.bf16.mxu0 %vm98_vm0, %v79_v27 }
  0x38   :  { %2914 = vmatmul.mubr.msk.bf16.gmra.mrb[4].mxu0 %vm98_vm0, %v80_v33  ;;  %v311_v33 = vld [vmem:[#allocation4] sm:$0xff] }
  0x39   :  { %2917 = vmatprep.mubr.msk.bf16.mxu0 %vm98_vm0, %v81_v34 }
  0x40   :  { %2918 = vmatmul.mubr.msk.bf16.gmra.mrb[8].mxu0 %vm98_vm0, %v82_v39 }
  0x41   :  { %2921 = vmatprep.mubr.msk.bf16.mxu0 %vm98_vm0, %v83_v40 }
  0x48   :  { %2922 = vmatmul.mubr.msk.bf16.gmra.mrb[12].mxu0 %vm98_vm0, %v84_v43 }
  0xab   :  { %v239_v46 = vpop.permute.xlu0 %238 }
 0x103   :  { %v2911_v45 = vpop.f32.mrb[0].mxu0 }
 0x104   :  { %v3796_v47 = vadd.f32 %v2911_v45, %v2679_v44  ;;  %v3798_v48 = vpop.f32.mrb[0].mxu1  ;;  %v157_v49 = vpop.f32.mrb[1].mxu0 }
 0x105   :  { %v296_v50 = vpop.f32.mrb[1].mxu1  ;;  %v2912_v51 = vpop.f32.mrb[2].mxu0  ;;  %v3804_v56 = vadd.f32 %v2679_v44, %v157_v49 }
 0x106   :  { %v297_v52 = vadd.f32 %v296_v50, %v239_v46  ;;  %v3800_v53 = vadd.f32 %v2912_v51, %v2679_v44  ;;  %v3802_v54 = vpop.f32.mrb[2].mxu1  ;;  %v160_v55 = vpop.f32.mrb[3].mxu0 }
 0x107   :  { %4841 = vst [vmem:[#allocation9_spill] sm:$0xff] %v3804_v56  ;;  %v3806_v57 = vadd.f32 %v2679_v44, %v160_v55  ;;  %v3808_v58 = vpop.f32.mrb[3].mxu1 }
 0x108   :  { %4840 = vst [vmem:[#allocation8_spill] sm:$0xff] %v3800_v53  ;;  %v394_v59 = vpack.c.bf16 %v297_v52, %v297_v52  ;;  %v3812_v60 = vpack.c.bf16 %v3800_v53, %v3796_v47 }
 0x109   :  { %4842 = vst [vmem:[#allocation10_spill] sm:$0xff] %v3806_v57  ;;  %v3816_v61 = vpack.c.bf16 %v3806_v57, %v3804_v56 }
 0x10a   :  { %v422_v62 = vsel %vm420_vm1, %v394_v59, 0  ;;  %3285 = vmatprep.subr.msk.bf16.mxu1 %vm420_vm1, %v394_v59  ;;  %683 = vrot.lane.b32.xlu1 %v3812_v60, %s3615_s0  ;;  %v321_v59 = vld [vmem:[#allocation4 + $0x50] sm:$0xff] }
 0x10b   :  { %2934 = vmatpush3.bf16.msra.mxu1 %v422_v62  ;;  %681 = vrot.lane.b32.xlu0 %v3816_v61, %s3615_s0  ;;  %v2915_v63 = vpop.f32.mrb[4].mxu0  ;;  %v314_v62 = vld [vmem:[#allocation4 + $0x18] sm:$0xff] }
 0x10c   :  { %2935 = vmatprep.mubr.msk.bf16.mxu1 %vm395_vm2, %v3816_v61  ;;  %v173_v0 = vpop.f32.mrb[5].mxu0  ;;  %v3830_v3 = vadd.f32 %v2915_v63, %v2679_v44 }
 0x10d   :  { %v3826_v1 = vadd.f32 %v2679_v44, %v173_v0  ;;  %v2916_v2 = vpop.f32.mrb[6].mxu0 }
 0x10e   :  { %2936 = vmatmul.mubr.msk.bf16.vlgmr.msra.gmra.mrb[4].mxu1 %vm395_vm2, %v3812_v60  ;;  %4844 = vst [vmem:[#allocation12_spill] sm:$0xff] %v3830_v3  ;;  %v3832_v4 = vadd.f32 %v2916_v2, %v2679_v44  ;;  %v176_v5 = vpop.f32.mrb[7].mxu0  ;;  %v325_v2 = vld [vmem:[#allocation4 + $0x70] sm:$0xff] }
 0x10f   :  { %4843 = vst [vmem:[#allocation11_spill] sm:$0xff] %v3826_v1  ;;  %v3834_v6 = vadd.f32 %v2679_v44, %v176_v5  ;;  %v312_v5 = vld [vmem:[#allocation4 + $0x8] sm:$0xff] }
 0x110   :  { %4845 = vst [vmem:[#allocation13_spill] sm:$0xff] %v3832_v4  ;;  %v3842_v8 = vpack.c.bf16 %v3832_v4, %v3830_v3 }
 0x111   :  { %4846 = vst [vmem:[#allocation14_spill] sm:$0xff] %v3834_v6  ;;  %v3838_v7 = vpack.c.bf16 %v3834_v6, %v3826_v1 }
 0x113   :  { %v2919_v9 = vpop.f32.mrb[8].mxu0  ;;  %2939 = vmatprep.mubr.msk.bf16.mxu1 %vm395_vm2, %v3838_v7  ;;  %685 = vrot.lane.b32.xlu0 %v3838_v7, %s3615_s0 }
 0x114   :  { %v189_v10 = vpop.f32.mrb[9].mxu0  ;;  %v3850_v13 = vadd.f32 %v2919_v9, %v2679_v44 }
 0x115   :  { %v3848_v11 = vadd.f32 %v2679_v44, %v189_v10  ;;  %v2920_v12 = vpop.f32.mrb[10].mxu0 }
 0x116   :  { %4848 = vst [vmem:[#allocation16_spill] sm:$0xff] %v3850_v13  ;;  %2940 = vmatmul.mubr.msk.bf16.gmra.mrb[8].mxu1 %vm395_vm2, %v3842_v8  ;;  %v3854_v14 = vadd.f32 %v2920_v12, %v2679_v44  ;;  %v192_v15 = vpop.f32.mrb[11].mxu0  ;;  %v323_v12 = vld [vmem:[#allocation4 + $0x60] sm:$0xff] }
 0x117   :  { %4847 = vst [vmem:[#allocation15_spill] sm:$0xff] %v3848_v11  ;;  %v3856_v16 = vadd.f32 %v2679_v44, %v192_v15  ;;  %v317_v15 = vld [vmem:[#allocation4 + $0x30] sm:$0xff] }
 0x118   :  { %4849 = vst [vmem:[#allocation17_spill] sm:$0xff] %v3854_v14  ;;  %v3864_v18 = vpack.c.bf16 %v3854_v14, %v3850_v13 }
 0x119   :  { %4850 = vst [vmem:[#allocation18_spill] sm:$0xff] %v3856_v16  ;;  %v3860_v17 = vpack.c.bf16 %v3856_v16, %v3848_v11 }
 0x11b   :  { %v2923_v19 = vpop.f32.mrb[12].mxu0  ;;  %2943 = vmatprep.mubr.msk.bf16.mxu1 %vm395_vm2, %v3860_v17 }
 0x11c   :  { %v205_v20 = vpop.f32.mrb[13].mxu0  ;;  %v3870_v23 = vadd.f32 %v2923_v19, %v2679_v44 }
 0x11d   :  { %v3868_v21 = vadd.f32 %v2679_v44, %v205_v20  ;;  %v2924_v22 = vpop.f32.mrb[14].mxu0 }
 0x11e   :  { %4852 = vst [vmem:[#allocation20_spill] sm:$0xff] %v3870_v23  ;;  %2944 = vmatmul.mubr.msk.bf16.gmra.mrb[12].mxu1 %vm395_vm2, %v3864_v18  ;;  %v3874_v24 = vadd.f32 %v2924_v22, %v2679_v44  ;;  %v208_v25 = vpop.f32.mrb[15].mxu0  ;;  %v315_v22 = vld [vmem:[#allocation4 + $0x20] sm:$0xff] }
 0x11f   :  { %4851 = vst [vmem:[#allocation19_spill] sm:$0xff] %v3868_v21  ;;  %v3876_v26 = vadd.f32 %v2679_v44, %v208_v25 }
 0x120   :  { %4853 = vst [vmem:[#allocation21_spill] sm:$0xff] %v3874_v24  ;;  %v3884_v28 = vpack.c.bf16 %v3874_v24, %v3870_v23 }
 0x121   :  { %4854 = vst [vmem:[#allocation22_spill] sm:$0xff] %v3876_v26  ;;  %v3880_v27 = vpack.c.bf16 %v3876_v26, %v3868_v21 }
 0x123   :  { %2947 = vmatprep.mubr.msk.bf16.mxu1 %vm395_vm2, %v3880_v27 }
 0x126   :  { %2948 = vmatmul.mubr.msk.bf16.gmra.mrb[16].mxu1 %vm395_vm2, %v3884_v28 }
 0x17c   :  { %v684_v30 = vpop.permute.xlu1 %683 }
 0x17d   :  { %v682_v29 = vpop.permute.xlu0 %681 }
 0x17e   :  { %2951 = vmatprep.subr.bf16.mxu0 %v682_v29 }
 0x17f   :  { %2952 = vmatpush3.bf16.msra.mxu0 %v682_v29  ;;  %v318_v29 = vld [vmem:[#allocation4 + $0x38] sm:$0xff] }
 0x180   :  { %2953 = vmatprep.subr.bf16.mxu0 %v684_v30 }
 0x183   :  { %2954 = vmatpush3.bf16.msra.mxu0 %v684_v30 }
 0x185   :  { %v686_v31 = vpop.permute.xlu0 %685 }
 0x186   :  { %2955 = vmatprep.subr.bf16.mxu0 %v686_v31 }
 0x187   :  { %2956 = vmatpush3.bf16.msra.mxu0 %v686_v31  ;;  %v316_v31 = vld [vmem:[#allocation4 + $0x28] sm:$0xff] }
 0x1e1   :  { %v2937_v34 = vpop.f32.mrb[4].mxu1 }
 0x1e2   :  { %v3890_v35 = vadd.f32 %v2937_v34, %v313_v32  ;;  %v458_v36 = vpop.f32.mrb[5].mxu1  ;;  %v319_v32 = vld [vmem:[#allocation4 + $0x40] sm:$0xff] }
 0x1e3   :  { %v3892_v37 = vadd.f32 %v458_v36, %v311_v33  ;;  %v2938_v38 = vpop.f32.mrb[6].mxu1  ;;  %v322_v36 = vld [vmem:[#allocation4 + $0x58] sm:$0xff] }
 0x1e4   :  { %525 = vmax.xlane.f32.xlu1 %v3890_v35  ;;  %v461_v39 = vpop.f32.mrb[7].mxu1  ;;  %v470_v0 = vadd.f32 %v2938_v38, %v314_v62 }
 0x1e5   :  { %521 = vmax.xlane.f32.xlu0 %v3892_v37  ;;  %v462_v10 = vadd.f32 %v461_v39, %v312_v5  ;;  %v320_v39 = vld [vmem:[#allocation4 + $0x48] sm:$0xff] }
 0x1e9   :  { %v2941_v40 = vpop.f32.mrb[8].mxu1 }
 0x1ea   :  { %v474_v41 = vpop.f32.mrb[9].mxu1  ;;  %v483_v20 = vadd.f32 %v2941_v40, %v317_v15 }
 0x1eb   :  { %v2942_v42 = vpop.f32.mrb[10].mxu1  ;;  %v475_v25 = vadd.f32 %v474_v41, %v315_v22  ;;  %v326_v41 = vld [vmem:[#allocation4 + $0x78] sm:$0xff] }
 0x1ec   :  { %v477_v43 = vpop.f32.mrb[11].mxu1  ;;  %v3909_v30 = vadd.f32 %v2942_v42, %v318_v29 }
 0x1ed   :  { %v3912_v33 = vadd.f32 %v477_v43, %v316_v31  ;;  %v324_v43 = vld [vmem:[#allocation4 + $0x68] sm:$0xff] }
 0x1f1   :  { %v2945_v44 = vpop.f32.mrb[12].mxu1 }
 0x1f2   :  { %v490_v45 = vpop.f32.mrb[13].mxu1  ;;  %v3900_v63 = vadd.f32 %v2945_v44, %v321_v59 }
 0x1f3   :  { %v2946_v46 = vpop.f32.mrb[14].mxu1  ;;  %v3914_v34 = vadd.f32 %v490_v45, %v319_v32 }
 0x1f4   :  { %v493_v49 = vpop.f32.mrb[15].mxu1  ;;  %v3917_v38 = vadd.f32 %v2946_v46, %v322_v36 }
 0x1f5   :  { %689 = vrot.lane.b32.xlu1 %v3860_v17, %s3615_s0  ;;  %v3920_v40 = vadd.f32 %v493_v49, %v320_v39 }
 0x1f9   :  { %v2949_v50 = vpop.f32.mrb[16].mxu1 }
 0x1fa   :  { %v506_v51 = vpop.f32.mrb[17].mxu1  ;;  %v3903_v9 = vadd.f32 %v2949_v50, %v325_v2 }
 0x1fb   :  { %687 = vrot.lane.b32.xlu0 %v3842_v8, %s3615_s0  ;;  %v2950_v52 = vpop.f32.mrb[18].mxu1  ;;  %v3906_v19 = vadd.f32 %v506_v51, %v323_v12 }
 0x1fc   :  { %v509_v55 = vpop.f32.mrb[19].mxu1  ;;  %v3926_v42 = vadd.f32 %v2950_v52, %v326_v41 }
 0x1fd   :  { %v3929_v44 = vadd.f32 %v509_v55, %v324_v43 }
 0x219   :  { %527 = vmax.xlane.f32.xlu1 %v470_v0 }
 0x21a   :  { %541 = vmax.xlane.f32.xlu0 %v3900_v63 }
 0x21d   :  { %523 = vmax.xlane.f32.xlu1 %v462_v10 }
 0x21e   :  { %549 = vmax.xlane.f32.xlu0 %v3903_v9 }
 0x221   :  { %533 = vmax.xlane.f32.xlu1 %v483_v20 }
 0x222   :  { %545 = vmax.xlane.f32.xlu0 %v3906_v19 }
 0x225   :  { %529 = vmax.xlane.f32.xlu1 %v475_v25 }
 0x229   :  { %535 = vmax.xlane.f32.xlu1 %v3909_v30 }
 0x22d   :  { %531 = vmax.xlane.f32.xlu1 %v3912_v33 }
 0x231   :  { %537 = vmax.xlane.f32.xlu1 %v3914_v34 }
 0x235   :  { %543 = vmax.xlane.f32.xlu1 %v3917_v38 }
 0x238   :  { %693 = vrot.lane.b32.xlu0 %v3880_v27, %s3615_s0 }
 0x239   :  { %539 = vmax.xlane.f32.xlu1 %v3920_v40 }
 0x23d   :  { %551 = vmax.xlane.f32.xlu1 %v3926_v42 }
 0x241   :  { %547 = vmax.xlane.f32.xlu1 %v3929_v44 }
 0x252   :  { %691 = vrot.lane.b32.xlu1 %v3864_v18, %s3615_s0 }
 0x271   :  { %v526_v45 = vpop.xlane.xlu1 %525 }
 0x272   :  { %v555_v46 = vsub.f32 %v3890_v35, %v526_v45  ;;  %v522_v49 = vpop.xlane.xlu0 %521 }
 0x273   :  { %v553_v50 = vsub.f32 %v3892_v37, %v522_v49 }
 0x274   :  { %v573_v51 = vmul.f32 1.442695, %v555_v46 }
 0x275   :  { %v569_v52 = vmul.f32 1.442695, %v553_v50  ;;  %v690_v62 = vpop.permute.xlu1 %689 }
 0x276   :  { %3306 = vpow2.f32 %v573_v51  ;;  %v688_v59 = vpop.permute.xlu0 %687 }
 0x277   :  { %2957 = vmatprep.subr.bf16.mxu0 %v688_v59  ;;  %3308 = vpow2.f32 %v569_v52 }
 0x278   :  { %2958 = vmatpush3.bf16.msra.mxu0 %v688_v59 }
 0x279   :  { %2959 = vmatprep.subr.bf16.mxu0 %v690_v62 }
 0x27c   :  { %2960 = vmatpush3.bf16.msra.mxu0 %v690_v62 }
 0x280   :  { %v3936_v55 = vpop.eup %3306 }
 0x281   :  { %605 = vadd.xlane.f32.xlu1 %v3936_v55  ;;  %v3939_v2 = vpop.eup %3308 }
 0x285   :  { %601 = vadd.xlane.f32.xlu1 %v3939_v2 }
 0x2a6   :  { %v528_v35 = vpop.xlane.xlu1 %527 }
 0x2a7   :  { %v556_v37 = vsub.f32 %v470_v0, %v528_v35  ;;  %v542_v39 = vpop.xlane.xlu0 %541 }
 0x2a8   :  { %v563_v46 = vsub.f32 %v3900_v63, %v542_v39 }
 0x2a9   :  { %v575_v5 = vmul.f32 1.442695, %v556_v37 }
 0x2aa   :  { %v524_v12 = vpop.xlane.xlu1 %523 }
 0x2ab   :  { %3310 = vpow2.f32 %v575_v5  ;;  %v554_v15 = vsub.f32 %v462_v10, %v524_v12 }
 0x2ad   :  { %v571_v22 = vmul.f32 1.442695, %v554_v15 }
 0x2ae   :  { %v534_v29 = vpop.xlane.xlu1 %533 }
 0x2af   :  { %3312 = vpow2.f32 %v571_v22  ;;  %v559_v31 = vsub.f32 %v483_v20, %v534_v29  ;;  %v589_v20 = vmul.f32 1.442695, %v563_v46  ;;  %v550_v29 = vpop.xlane.xlu0 %549 }
 0x2b1   :  { %v581_v32 = vmul.f32 1.442695, %v559_v31 }
 0x2b2   :  { %v530_v36 = vpop.xlane.xlu1 %529 }
 0x2b3   :  { %3314 = vpow2.f32 %v581_v32  ;;  %v557_v41 = vsub.f32 %v475_v25, %v530_v36  ;;  %v546_v39 = vpop.xlane.xlu0 %545 }
 0x2b5   :  { %v3942_v43 = vpop.eup %3310  ;;  %v577_v45 = vmul.f32 1.442695, %v557_v41 }
 0x2b6   :  { %v536_v49 = vpop.xlane.xlu1 %535  ;;  %607 = vadd.xlane.f32.xlu1 %v3942_v43 }
 0x2b7   :  { %3316 = vpow2.f32 %v577_v45  ;;  %v560_v0 = vsub.f32 %v3909_v30, %v536_v49 }
 0x2b9   :  { %v3947_v10 = vpop.eup %3312  ;;  %v583_v50 = vmul.f32 1.442695, %v560_v0 }
 0x2ba   :  { %v532_v51 = vpop.xlane.xlu1 %531  ;;  %603 = vadd.xlane.f32.xlu1 %v3947_v10 }
 0x2bb   :  { %3318 = vpow2.f32 %v583_v50  ;;  %v558_v25 = vsub.f32 %v3912_v33, %v532_v51  ;;  %v694_v50 = vpop.permute.xlu0 %693  ;;  %v567_v51 = vsub.f32 %v3903_v9, %v550_v29 }
 0x2bc   :  { %3320 = vpow2.f32 %v589_v20 }
 0x2bd   :  { %v3951_v52 = vpop.eup %3314  ;;  %v579_v59 = vmul.f32 1.442695, %v558_v25 }
 0x2be   :  { %v538_v63 = vpop.xlane.xlu1 %537  ;;  %613 = vadd.xlane.f32.xlu0 %v3951_v52 }
 0x2bf   :  { %3322 = vpow2.f32 %v579_v59  ;;  %v561_v30 = vsub.f32 %v3914_v34, %v538_v63  ;;  %v233_v59 = vld [vmem:[%s4820_s5 + $0x8] sm:$0xff]  ;;  %v597_v63 = vmul.f32 1.442695, %v567_v51 }
 0x2c1   :  { %v3955_v62 = vpop.eup %3316  ;;  %v585_v35 = vmul.f32 1.442695, %v561_v30  ;;  %v565_v30 = vsub.f32 %v3906_v19, %v546_v39 }
 0x2c2   :  { %v544_v37 = vpop.xlane.xlu1 %543  ;;  %609 = vadd.xlane.f32.xlu0 %v3955_v62 }
 0x2c3   :  { %3324 = vpow2.f32 %v585_v35  ;;  %v564_v5 = vsub.f32 %v3917_v38, %v544_v37  ;;  %v593_v35 = vmul.f32 1.442695, %v565_v30  ;;  %v375_v37 = vld [vmem:[#allocation2] sm:$0xff] }
 0x2c5   :  { %v3959_v33 = vpop.eup %3318  ;;  %v591_v12 = vmul.f32 1.442695, %v564_v5  ;;  %v810_v5 = vpack.c.bf16 %v375_v37, %v375_v37 }
 0x2c6   :  { %v540_v15 = vpop.xlane.xlu1 %539  ;;  %615 = vadd.xlane.f32.xlu0 %v3959_v33  ;;  %v3962_v22 = vpop.eup %3320 }
 0x2c7   :  { %3326 = vpow2.f32 %v591_v12  ;;  %v562_v20 = vsub.f32 %v3920_v40, %v540_v15  ;;  %3286 = vmatprep.subr.msk.bf16.mxu1 %vm420_vm1, %v810_v5  ;;  %v836_v12 = vsel %vm420_vm1, %v810_v5, 0 }
 0x2c8   :  { %2984 = vmatpush3.bf16.msra.mxu1 %v836_v12 }
 0x2c9   :  { %v3964_v34 = vpop.eup %3322  ;;  %v587_v25 = vmul.f32 1.442695, %v562_v20 }
 0x2ca   :  { %v552_v31 = vpop.xlane.xlu1 %551  ;;  %611 = vadd.xlane.f32.xlu1 %v3964_v34  ;;  %621 = vadd.xlane.f32.xlu0 %v3962_v22 }
 0x2cb   :  { %v568_v32 = vsub.f32 %v3926_v42, %v552_v31 }
 0x2cd   :  { %v3969_v38 = vpop.eup %3324  ;;  %v599_v36 = vmul.f32 1.442695, %v568_v32 }
 0x2ce   :  { %v548_v41 = vpop.xlane.xlu1 %547  ;;  %617 = vadd.xlane.f32.xlu0 %v3969_v38 }
 0x2cf   :  { %3328 = vpow2.f32 %v599_v36  ;;  %v566_v45 = vsub.f32 %v3929_v44, %v548_v41 }
 0x2d1   :  { %v3973_v46 = vpop.eup %3326  ;;  %v595_v49 = vmul.f32 1.442695, %v566_v45 }
 0x2d2   :  { %v692_v0 = vpop.permute.xlu1 %691  ;;  %623 = vadd.xlane.f32.xlu0 %v3973_v46 }
 0x2d3   :  { %3330 = vpow2.f32 %v595_v49  ;;  %2961 = vmatprep.subr.bf16.mxu0 %v692_v0 }
 0x2d4   :  { %2962 = vmatpush3.bf16.msra.mxu0 %v692_v0  ;;  %3332 = vpow2.f32 %v587_v25 }
 0x2d5   :  { %2963 = vmatprep.subr.bf16.mxu0 %v694_v50  ;;  %3334 = vpow2.f32 %v597_v63 }
 0x2d6   :  { %3336 = vpow2.f32 %v593_v35 }
 0x2d8   :  { %2964 = vmatpush3.bf16.msra.mxu0 %v694_v50 }
 0x2d9   :  { %v3976_v42 = vpop.eup %3328 }
 0x2da   :  { %631 = vadd.xlane.f32.xlu0 %v3976_v42 }
 0x2db   :  { %695 = vrot.lane.b32.xlu1 %v3884_v28, %s3615_s0 }
 0x2dd   :  { %v3981_v44 = vpop.eup %3330 }
 0x2de   :  { %627 = vadd.xlane.f32.xlu0 %v3981_v44  ;;  %v3994_v9 = vpop.eup %3332 }
 0x2df   :  { %v3997_v40 = vpop.eup %3334 }
 0x2e0   :  { %v4000_v19 = vpop.eup %3336 }
 0x2f4   :  { %243 = vperm.xlu0 %3305, %v233_v59  }
 0x2f8   :  { %956 = vrot.lane.b32.xlu0 %v3838_v7, %s3616_s22 }
 0x2fc   :  { %960 = vrot.lane.b32.xlu0 %v3860_v17, %s3616_s22 }
 0x2ff   :  { %619 = vadd.xlane.f32.xlu1 %v3994_v9 }
 0x303   :  { %629 = vadd.xlane.f32.xlu1 %v3997_v40 }
 0x307   :  { %625 = vadd.xlane.f32.xlu1 %v4000_v19 }
 0x30e   :  { %v606_v15 = vpop.xlane.xlu1 %605 }
 0x312   :  { %v602_v29 = vpop.xlane.xlu1 %601 }
 0x313   :  { %3338 = vrcp.f32 %v602_v29 }
 0x318   :  { %952 = vrot.lane.b32.xlu1 %v3816_v61, %s3616_s22 }
 0x31c   :  { %954 = vrot.lane.b32.xlu1 %v3812_v60, %s3616_s22 }
 0x31d   :  { %v3339_v41 = vpop.eup %3338 }
 0x31e   :  { %v649_v0 = vmul.f32 %v3339_v41, %v3939_v2 }
 0x320   :  { %958 = vrot.lane.b32.xlu1 %v3842_v8, %s3616_s22 }
 0x324   :  { %962 = vrot.lane.b32.xlu1 %v3864_v18, %s3616_s22 }
 0x328   :  { %1244 = vrot.lane.b32.xlu1 %v3816_v61, %s3617_s23 }
 0x343   :  { %v608_v31 = vpop.xlane.xlu1 %607 }
 0x347   :  { %v604_v32 = vpop.xlane.xlu1 %603 }
 0x348   :  { %3340 = vrcp.f32 %v604_v32 }
 0x349   :  { %3342 = vrcp.f32 %v608_v31 }
 0x34a   :  { %3344 = vrcp.f32 %v606_v15 }
 0x34b   :  { %v614_v36 = vpop.xlane.xlu0 %613 }
 0x34f   :  { %v610_v39 = vpop.xlane.xlu0 %609 }
 0x352   :  { %v3341_v45 = vpop.eup %3340 }
 0x353   :  { %v616_v49 = vpop.xlane.xlu0 %615  ;;  %v650_v50 = vmul.f32 %v3341_v45, %v3947_v10  ;;  %v3343_v51 = vpop.eup %3342 }
 0x354   :  { %3346 = vrcp.f32 %v616_v49  ;;  %v3345_v59 = vpop.eup %3344  ;;  %v652_v30 = vmul.f32 %v3343_v51, %v3942_v43 }
 0x355   :  { %v665_v20 = vpack.c.bf16 %v650_v50, %v649_v0  ;;  %3348 = vrcp.f32 %v610_v39  ;;  %v651_v37 = vmul.f32 %v3345_v59, %v3936_v55 }
 0x356   :  { %3350 = vrcp.f32 %v614_v36 }
 0x357   :  { %2967 = vmatprep.mubr.bf16.mxu0 %v665_v20  ;;  %v612_v25 = vpop.xlane.xlu1 %611  ;;  %v622_v63 = vpop.xlane.xlu0 %621  ;;  %v666_v2 = vpack.c.bf16 %v652_v30, %v651_v37 }
 0x358   :  { %3352 = vrcp.f32 %v612_v25 }
 0x35b   :  { %v696_v35 = vpop.permute.xlu1 %695  ;;  %v618_v10 = vpop.xlane.xlu0 %617 }
 0x35c   :  { %2965 = vmatprep.subr.bf16.mxu0 %v696_v35 }
 0x35d   :  { %2966 = vmatpush3.bf16.msra.mxu0 %v696_v35 }
 0x35e   :  { %v3347_v5 = vpop.eup %3346 }
 0x35f   :  { %v3349_v12 = vpop.eup %3348  ;;  %v656_v31 = vmul.f32 %v3347_v5, %v3959_v33  ;;  %v624_v39 = vpop.xlane.xlu0 %623 }
 0x360   :  { %2968 = vmatmul.mubr.bf16.vlgmr.msra.gmra.mrb[16].mxu0 %v666_v2  ;;  %v3351_v15 = vpop.eup %3350  ;;  %v653_v32 = vmul.f32 %v3349_v12, %v3955_v62  ;;  %3354 = vrcp.f32 %v624_v39 }
 0x361   :  { %v655_v43 = vmul.f32 %v3351_v15, %v3951_v52  ;;  %3356 = vrcp.f32 %v618_v10 }
 0x362   :  { %v3353_v29 = vpop.eup %3352  ;;  %3358 = vrcp.f32 %v622_v63 }
 0x363   :  { %v654_v36 = vmul.f32 %v3353_v29, %v3964_v34  ;;  %v668_v55 = vpack.c.bf16 %v656_v31, %v655_v43 }
 0x365   :  { %v667_v41 = vpack.c.bf16 %v654_v36, %v653_v32 }
 0x367   :  { %2971 = vmatprep.mubr.bf16.mxu0 %v667_v41  ;;  %v632_v45 = vpop.xlane.xlu0 %631 }
 0x368   :  { %2972 = vmatmul.mubr.bf16.gmra.mrb[20].mxu0 %v668_v55 }
 0x36a   :  { %v3355_v34 = vpop.eup %3354 }
 0x36b   :  { %v628_v49 = vpop.xlane.xlu0 %627  ;;  %v3357_v25 = vpop.eup %3356  ;;  %v660_v30 = vmul.f32 %v3355_v34, %v3973_v46 }
 0x36c   :  { %v657_v37 = vmul.f32 %v3357_v25, %v3969_v38 }
 0x373   :  { %v244_v0 = vpop.permute.xlu0 %243 }
 0x374   :  { %v300_v50 = vadd.f32 %v3808_v58, %v244_v0  ;;  %v3359_v58 = vpop.eup %3358 }
 0x375   :  { %v659_v63 = vmul.f32 %v3359_v58, %v3962_v22 }
 0x376   :  { %v951_v20 = vpack.c.bf16 %v300_v50, %v300_v50 }
 0x377   :  { %v670_v10 = vpack.c.bf16 %v660_v30, %v659_v63 }
 0x378   :  { %3287 = vmatprep.subr.msk.bf16.mxu0 %vm420_vm1, %v951_v20  ;;  %v993_v33 = vsel %vm420_vm1, %v951_v20, 0 }
 0x379   :  { %3002 = vmatpush3.bf16.msra.mxu0 %v993_v33 }
 0x38c   :  { %v620_v52 = vpop.xlane.xlu1 %619 }
 0x38d   :  { %3360 = vrcp.f32 %v620_v52 }
 0x390   :  { %v630_v62 = vpop.xlane.xlu1 %629 }
 0x391   :  { %3362 = vrcp.f32 %v630_v62 }
 0x392   :  { %3364 = vrcp.f32 %v628_v49 }
 0x393   :  { %3366 = vrcp.f32 %v632_v45  ;;  %v957_v45 = vpop.permute.xlu0 %956 }
 0x394   :  { %v626_v51 = vpop.xlane.xlu1 %625 }
 0x395   :  { %3368 = vrcp.f32 %v626_v51 }
 0x397   :  { %v3361_v59 = vpop.eup %3360 }
 0x398   :  { %v953_v35 = vpop.permute.xlu1 %952  ;;  %v658_v2 = vmul.f32 %v3361_v59, %v3994_v9 }
 0x39a   :  { %v669_v5 = vpack.c.bf16 %v658_v2, %v657_v37 }
 0x39b   :  { %v3363_v12 = vpop.eup %3362 }
 0x39c   :  { %v955_v15 = vpop.permute.xlu1 %954  ;;  %2975 = vmatprep.mubr.bf16.mxu0 %v669_v5  ;;  %v3365_v29 = vpop.eup %3364  ;;  %v663_v36 = vmul.f32 %v3363_v12, %v3997_v40 }
 0x39d   :  { %2976 = vmatmul.mubr.bf16.gmra.mrb[24].mxu0 %v670_v10  ;;  %v3367_v31 = vpop.eup %3366  ;;  %v662_v38 = vmul.f32 %v3365_v29, %v3981_v44  ;;  %v961_v40 = vpop.permute.xlu0 %960  ;;  %v329_v29 = vld [vmem:[#allocation4 + $0x90] sm:$0xff] }
 0x39e   :  { %v664_v9 = vmul.f32 %v3367_v31, %v3976_v42 }
 0x39f   :  { %v3369_v32 = vpop.eup %3368 }
 0x3a0   :  { %v959_v43 = vpop.permute.xlu1 %958  ;;  %v661_v46 = vmul.f32 %v3369_v32, %v4000_v19  ;;  %v672_v22 = vpack.c.bf16 %v664_v9, %v663_v36 }
 0x3a2   :  { %v671_v39 = vpack.c.bf16 %v662_v38, %v661_v46  ;;  %v327_v46 = vld [vmem:[#allocation4 + $0x80] sm:$0xff] }
 0x3a4   :  { %v963_v41 = vpop.permute.xlu1 %962  ;;  %2979 = vmatprep.mubr.bf16.mxu0 %v671_v39 }
 0x3a5   :  { %2980 = vmatmul.mubr.bf16.gmra.mrb[28].mxu0 %v672_v22 }
 0x3a6   :  { %3003 = vmatprep.mubr.msk.bf16.mxu0 %vm395_vm2, %v953_v35 }
 0x3a8   :  { %v1245_v55 = vpop.permute.xlu1 %1244 }
 0x3a9   :  { %3019 = vmatprep.subr.bf16.mxu0 %v1245_v55  ;;  %3205 = vmatprep.subr.bf16.mxu1 %v1245_v55 }
 0x3ad   :  { %3004 = vmatmul.mubr.msk.bf16.vlgmr.msra.gmra.mrb[32].mxu0 %vm395_vm2, %v955_v15 }
 0x3ae   :  { %3020 = vmatpush3.bf16.msra.mxu0 %v1245_v55  ;;  %3007 = vmatprep.mubr.msk.bf16.mxu0 %vm395_vm2, %v957_v45 }
 0x3b5   :  { %3008 = vmatmul.mubr.msk.bf16.gmra.mrb[36].mxu0 %vm395_vm2, %v959_v43  ;;  %v328_v43 = vld [vmem:[#allocation4 + $0x88] sm:$0xff] }
 0x3b6   :  { %3011 = vmatprep.mubr.msk.bf16.mxu0 %vm395_vm2, %v961_v40 }
 0x3bd   :  { %3012 = vmatmul.mubr.msk.bf16.gmra.mrb[40].mxu0 %vm395_vm2, %v963_v41  ;;  %v330_v41 = vld [vmem:[#allocation4 + $0x98] sm:$0xff] }
 0x433   :  { %v2969_v42 = vpop.f32.mrb[16].mxu0 }
 0x434   :  { %v739_v44 = vpop.f32.mrb[17].mxu0 }
 0x435   :  { %v2970_v19 = vpop.f32.mrb[18].mxu0 }
 0x436   :  { %v803_v49 = vpack.c.bf16 %v2970_v19, %v2969_v42  ;;  %v742_v0 = vpop.f32.mrb[19].mxu0  ;;  %v331_v19 = vld [vmem:[#allocation4 + $0xa0] sm:$0xff] }
 0x437   :  { %v802_v50 = vpack.c.bf16 %v742_v0, %v739_v44 }
 0x439   :  { %2985 = vmatprep.mubr.msk.bf16.mxu1 %vm395_vm2, %v802_v50 }
 0x43a   :  { %2986 = vmatmul.mubr.msk.bf16.vlgmr.msra.gmra.mrb[20].mxu1 %vm395_vm2, %v803_v49  ;;  %v334_v49 = vld [vmem:[#allocation4 + $0xb8] sm:$0xff] }
 0x43b   :  { %3213 = vmatpush3.bf16.msra.mxu1 %v1245_v55  ;;  %v2973_v20 = vpop.f32.mrb[20].mxu0  ;;  %v333_v55 = vld [vmem:[#allocation4 + $0xb0] sm:$0xff] }
 0x43c   :  { %v755_v33 = vpop.f32.mrb[21].mxu0 }
 0x43d   :  { %v2974_v52 = vpop.f32.mrb[22].mxu0 }
 0x43e   :  { %v805_v62 = vpack.c.bf16 %v2974_v52, %v2973_v20  ;;  %v758_v34 = vpop.f32.mrb[23].mxu0  ;;  %v332_v52 = vld [vmem:[#allocation4 + $0xa8] sm:$0xff] }
 0x43f   :  { %v804_v51 = vpack.c.bf16 %v758_v34, %v755_v33 }
 0x441   :  { %2989 = vmatprep.mubr.msk.bf16.mxu1 %vm395_vm2, %v804_v51 }
 0x442   :  { %2990 = vmatmul.mubr.msk.bf16.gmra.mrb[24].mxu1 %vm395_vm2, %v805_v62  ;;  %v337_v62 = vld [vmem:[#allocation4 + $0xd0] sm:$0xff] }
 0x470   :  { %v2977_v25 = vpop.f32.mrb[24].mxu0 }
 0x471   :  { %v771_v58 = vpop.f32.mrb[25].mxu0 }
 0x472   :  { %v2978_v59 = vpop.f32.mrb[26].mxu0 }
 0x473   :  { %v807_v30 = vpack.c.bf16 %v2978_v59, %v2977_v25  ;;  %v774_v35 = vpop.f32.mrb[27].mxu0  ;;  %v335_v59 = vld [vmem:[#allocation4 + $0xc0] sm:$0xff] }
 0x474   :  { %v806_v37 = vpack.c.bf16 %v774_v35, %v771_v58 }
 0x476   :  { %2993 = vmatprep.mubr.msk.bf16.mxu1 %vm395_vm2, %v806_v37 }
 0x477   :  { %2994 = vmatmul.mubr.msk.bf16.gmra.mrb[28].mxu1 %vm395_vm2, %v807_v30 }
 0x478   :  { %v2981_v2 = vpop.f32.mrb[28].mxu0 }
 0x479   :  { %v787_v63 = vpop.f32.mrb[29].mxu0 }
 0x47a   :  { %v2982_v5 = vpop.f32.mrb[30].mxu0 }
 0x47b   :  { %v809_v10 = vpack.c.bf16 %v2982_v5, %v2981_v2  ;;  %v790_v12 = vpop.f32.mrb[31].mxu0  ;;  %v338_v2 = vld [vmem:[#allocation4 + $0xd8] sm:$0xff]  ;;  %v336_v5 = vld [vmem:[#allocation4 + $0xc8] sm:$0xff] }
 0x47c   :  { %v808_v15 = vpack.c.bf16 %v790_v12, %v787_v63 }
 0x47e   :  { %2997 = vmatprep.mubr.msk.bf16.mxu1 %vm395_vm2, %v808_v15 }
 0x47f   :  { %2998 = vmatmul.mubr.msk.bf16.gmra.mrb[32].mxu1 %vm395_vm2, %v809_v10 }
 0x480   :  { %v3005_v31 = vpop.f32.mrb[32].mxu0 }
 0x481   :  { %v1038_v32 = vadd.f32 %v3005_v31, %v329_v29  ;;  %v1029_v36 = vpop.f32.mrb[33].mxu0 }
 0x482   :  { %v3006_v38 = vpop.f32.mrb[34].mxu0  ;;  %v1030_v22 = vadd.f32 %v1029_v36, %v327_v46 }
 0x483   :  { %1096 = vmax.xlane.f32.xlu0 %v1038_v32  ;;  %v1032_v9 = vpop.f32.mrb[35].mxu0  ;;  %v1041_v40 = vadd.f32 %v3006_v38, %v330_v41 }
 0x484   :  { %v4048_v39 = vadd.f32 %v1032_v9, %v328_v43 }
 0x486   :  { %1094 = vmax.xlane.f32.xlu1 %v4048_v39 }
 0x487   :  { %1092 = vmax.xlane.f32.xlu0 %v1030_v22 }
 0x488   :  { %v3009_v45 = vpop.f32.mrb[36].mxu0 }
 0x489   :  { %v1054_v42 = vadd.f32 %v3009_v45, %v333_v55  ;;  %v1045_v44 = vpop.f32.mrb[37].mxu0 }
 0x48a   :  { %v3010_v0 = vpop.f32.mrb[38].mxu0  ;;  %v1046_v20 = vadd.f32 %v1045_v44, %v331_v19 }
 0x48b   :  { %1098 = vmax.xlane.f32.xlu0 %v1041_v40  ;;  %1104 = vmax.xlane.f32.xlu1 %v1054_v42  ;;  %v1048_v50 = vpop.f32.mrb[39].mxu0  ;;  %v1057_v33 = vadd.f32 %v3010_v0, %v334_v49 }
 0x48c   :  { %v1049_v51 = vadd.f32 %v1048_v50, %v332_v52 }
 0x48f   :  { %1106 = vmax.xlane.f32.xlu0 %v1057_v33  ;;  %1100 = vmax.xlane.f32.xlu1 %v1046_v20 }
 0x490   :  { %v3013_v34 = vpop.f32.mrb[40].mxu0 }
 0x491   :  { %v1070_v25 = vadd.f32 %v3013_v34, %v337_v62  ;;  %v1061_v58 = vpop.f32.mrb[41].mxu0 }
 0x492   :  { %v3014_v30 = vpop.f32.mrb[42].mxu0  ;;  %v4051_v37 = vadd.f32 %v1061_v58, %v335_v59 }
 0x493   :  { %1102 = vmax.xlane.f32.xlu0 %v1049_v51  ;;  %1112 = vmax.xlane.f32.xlu1 %v1070_v25  ;;  %v1064_v35 = vpop.f32.mrb[43].mxu0  ;;  %v4066_v63 = vadd.f32 %v3014_v30, %v338_v2 }
 0x494   :  { %v4069_v10 = vadd.f32 %v1064_v35, %v336_v5 }
 0x497   :  { %1108 = vmax.xlane.f32.xlu1 %v4051_v37 }
 0x4a8   :  { %1246 = vrot.lane.b32.xlu1 %v3812_v60, %s3617_s23 }
 0x4a9   :  { %1248 = vrot.lane.b32.xlu0 %v3838_v7, %s3617_s23 }
 0x4ac   :  { %1250 = vrot.lane.b32.xlu1 %v3842_v8, %s3617_s23 }
 0x4b0   :  { %964 = vrot.lane.b32.xlu1 %v3880_v27, %s3616_s22 }
 0x4b4   :  { %966 = vrot.lane.b32.xlu1 %v3884_v28, %s3616_s22 }
 0x4b8   :  { %1258 = vrot.lane.b32.xlu1 %v3884_v28, %s3617_s23 }
 0x4c8   :  { %1114 = vmax.xlane.f32.xlu0 %v4066_v63 }
 0x4cc   :  { %1110 = vmax.xlane.f32.xlu0 %v4069_v10 }
 0x4e2   :  { %1252 = vrot.lane.b32.xlu0 %v3860_v17, %s3617_s23 }
 0x4e6   :  { %1254 = vrot.lane.b32.xlu0 %v3864_v18, %s3617_s23 }
 0x4ea   :  { %1256 = vrot.lane.b32.xlu0 %v3880_v27, %s3617_s23 }
 0x510   :  { %v1097_v12 = vpop.xlane.xlu0 %1096 }
 0x511   :  { %v1126_v15 = vsub.f32 %v1038_v32, %v1097_v12 }
 0x513   :  { %v1144_v29 = vmul.f32 1.442695, %v1126_v15  ;;  %v1095_v31 = vpop.xlane.xlu1 %1094 }
 0x514   :  { %v1093_v36 = vpop.xlane.xlu0 %1092  ;;  %v1125_v45 = vsub.f32 %v4048_v39, %v1095_v31 }
 0x515   :  { %3370 = vpow2.f32 %v1144_v29  ;;  %v1124_v43 = vsub.f32 %v1030_v22, %v1093_v36 }
 0x516   :  { %v1142_v52 = vmul.f32 1.442695, %v1125_v45 }
 0x517   :  { %v1140_v46 = vmul.f32 1.442695, %v1124_v43 }
 0x518   :  { %v1105_v38 = vpop.xlane.xlu1 %1104  ;;  %v1099_v9 = vpop.xlane.xlu0 %1098 }
 0x519   :  { %3372 = vpow2.f32 %v1140_v46  ;;  %v1130_v41 = vsub.f32 %v1054_v42, %v1105_v38  ;;  %v1127_v55 = vsub.f32 %v1041_v40, %v1099_v9 }
 0x51b   :  { %v1152_v44 = vmul.f32 1.442695, %v1130_v41  ;;  %v1146_v19 = vmul.f32 1.442695, %v1127_v55 }
 0x51c   :  { %v1101_v49 = vpop.xlane.xlu1 %1100  ;;  %v1107_v0 = vpop.xlane.xlu0 %1106 }
 0x51d   :  { %3374 = vpow2.f32 %v1152_v44  ;;  %v1128_v50 = vsub.f32 %v1046_v20, %v1101_v49  ;;  %v1131_v32 = vsub.f32 %v1057_v33, %v1107_v0 }
 0x51e   :  { %3376 = vpow2.f32 %v1146_v19 }
 0x51f   :  { %v4079_v62 = vpop.eup %3370  ;;  %v1148_v22 = vmul.f32 1.442695, %v1128_v50  ;;  %v1154_v40 = vmul.f32 1.442695, %v1131_v32 }
 0x520   :  { %v1113_v34 = vpop.xlane.xlu1 %1112  ;;  %1176 = vadd.xlane.f32.xlu0 %v4079_v62  ;;  %v1103_v58 = vpop.xlane.xlu0 %1102 }
 0x521   :  { %3378 = vpow2.f32 %v1148_v22  ;;  %v1134_v42 = vsub.f32 %v1070_v25, %v1113_v34  ;;  %v1129_v39 = vsub.f32 %v1049_v51, %v1103_v58  ;;  %v234_v22 = vld [vmem:[%s4820_s5 + $0x10] sm:$0xff]  ;;  %v235_v34 = vld [vmem:[%s4820_s5 + $0x18] sm:$0xff]  ;;  %s3621_s5 = smov 40  }
 0x522   :  { %3380 = vpow2.f32 %v1142_v52 }
 0x523   :  { %v4082_v59 = vpop.eup %3372  ;;  %v1150_v30 = vmul.f32 1.442695, %v1129_v39  ;;  %3382 = vpow2.f32 %v1154_v40  ;;  %v1160_v20 = vmul.f32 1.442695, %v1134_v42 }
 0x524   :  { %v1109_v35 = vpop.xlane.xlu1 %1108  ;;  %1172 = vadd.xlane.f32.xlu0 %v4082_v59  ;;  %v1249_v12 = vpop.permute.xlu0 %1248 }
 0x525   :  { %v1132_v33 = vsub.f32 %v4051_v37, %v1109_v35  ;;  %3384 = vpow2.f32 %v1150_v30 }
 0x526   :  { %3386 = vpow2.f32 %v1160_v20 }
 0x527   :  { %v4086_v2 = vpop.eup %3374  ;;  %v1156_v51 = vmul.f32 1.442695, %v1132_v33 }
 0x528   :  { %v4088_v5 = vpop.eup %3376  ;;  %1184 = vadd.xlane.f32.xlu1 %v4086_v2  ;;  %v1247_v25 = vpop.permute.xlu1 %1246 }
 0x529   :  { %1178 = vadd.xlane.f32.xlu0 %v4088_v5  ;;  %3021 = vmatprep.subr.bf16.mxu0 %v1247_v25  ;;  %3388 = vpow2.f32 %v1156_v51 }
 0x52a   :  { %3206 = vmatprep.subr.bf16.mxu1 %v1247_v25  ;;  %3022 = vmatpush3.bf16.msra.mxu0 %v1247_v25 }
 0x52b   :  { %v4092_v15 = vpop.eup %3378  ;;  %3214 = vmatpush3.bf16.msra.mxu1 %v1247_v25  ;;  %3023 = vmatprep.subr.bf16.mxu0 %v1249_v12 }
 0x52c   :  { %v4094_v37 = vpop.eup %3380  ;;  %3207 = vmatprep.subr.bf16.mxu1 %v1249_v12  ;;  %1180 = vadd.xlane.f32.xlu1 %v4092_v15  ;;  %v1251_v29 = vpop.permute.xlu1 %1250 }
 0x52d   :  { %1174 = vadd.xlane.f32.xlu0 %v4094_v37  ;;  %v4098_v31 = vpop.eup %3382 }
 0x52e   :  { %3024 = vmatpush3.bf16.msra.mxu0 %v1249_v12 }
 0x52f   :  { %3215 = vmatpush3.bf16.msra.mxu1 %v1249_v12  ;;  %3025 = vmatprep.subr.bf16.mxu0 %v1251_v29  ;;  %v4100_v36 = vpop.eup %3384 }
 0x530   :  { %3208 = vmatprep.subr.bf16.mxu1 %v1251_v29  ;;  %v965_v43 = vpop.permute.xlu1 %964  ;;  %1186 = vadd.xlane.f32.xlu1 %v4098_v31  ;;  %v4105_v46 = vpop.eup %3386 }
 0x531   :  { %1182 = vadd.xlane.f32.xlu0 %v4100_v36  ;;  %3015 = vmatprep.mubr.msk.bf16.mxu0 %vm395_vm2, %v965_v43 }
 0x532   :  { %3026 = vmatpush3.bf16.msra.mxu0 %v1251_v29 }
 0x533   :  { %3216 = vmatpush3.bf16.msra.mxu1 %v1251_v29  ;;  %v4109_v9 = vpop.eup %3388 }
 0x534   :  { %v967_v38 = vpop.permute.xlu1 %966  ;;  %1192 = vadd.xlane.f32.xlu1 %v4105_v46 }
 0x535   :  { %3016 = vmatmul.mubr.msk.bf16.gmra.mrb[44].mxu0 %vm395_vm2, %v967_v38 }
 0x538   :  { %1188 = vadd.xlane.f32.xlu1 %v4109_v9 }
 0x555   :  { %v1115_v41 = vpop.xlane.xlu0 %1114 }
 0x556   :  { %v1135_v55 = vsub.f32 %v4066_v63, %v1115_v41 }
 0x558   :  { %v1162_v45 = vmul.f32 1.442695, %v1135_v55 }
 0x559   :  { %v1111_v44 = vpop.xlane.xlu0 %1110 }
 0x55a   :  { %3390 = vpow2.f32 %v1162_v45  ;;  %v1133_v19 = vsub.f32 %v4069_v10, %v1111_v44  ;;  %v1259_v10 = vpop.permute.xlu1 %1258 }
 0x55c   :  { %v1158_v49 = vmul.f32 1.442695, %v1133_v19 }
 0x55d   :  { %v1253_v0 = vpop.permute.xlu0 %1252 }
 0x55e   :  { %3392 = vpow2.f32 %v1158_v49  ;;  %3027 = vmatprep.subr.bf16.mxu0 %v1253_v0  ;;  %3209 = vmatprep.subr.bf16.mxu1 %v1253_v0 }
 0x55f   :  { %3028 = vmatpush3.bf16.msra.mxu0 %v1253_v0  ;;  %3217 = vmatpush3.bf16.msra.mxu1 %v1253_v0 }
 0x561   :  { %v1255_v50 = vpop.permute.xlu0 %1254 }
 0x562   :  { %3029 = vmatprep.subr.bf16.mxu0 %v1255_v50  ;;  %3210 = vmatprep.subr.bf16.mxu1 %v1255_v50 }
 0x563   :  { %3030 = vmatpush3.bf16.msra.mxu0 %v1255_v50  ;;  %3218 = vmatpush3.bf16.msra.mxu1 %v1255_v50 }
 0x564   :  { %v4114_v32 = vpop.eup %3390 }
 0x565   :  { %1194 = vadd.xlane.f32.xlu1 %v4114_v32  ;;  %v1257_v63 = vpop.permute.xlu0 %1256 }
 0x566   :  { %3031 = vmatprep.subr.bf16.mxu0 %v1257_v63  ;;  %3211 = vmatprep.subr.bf16.mxu1 %v1257_v63 }
 0x567   :  { %3032 = vmatpush3.bf16.msra.mxu0 %v1257_v63  ;;  %3219 = vmatpush3.bf16.msra.mxu1 %v1257_v63 }
 0x568   :  { %v4117_v52 = vpop.eup %3392  ;;  %3033 = vmatprep.subr.bf16.mxu0 %v1259_v10  ;;  %3212 = vmatprep.subr.bf16.mxu1 %v1259_v10 }
 0x569   :  { %1190 = vadd.xlane.f32.xlu0 %v4117_v52 }
 0x56b   :  { %3034 = vmatpush3.bf16.msra.mxu0 %v1259_v10  ;;  %3220 = vmatpush3.bf16.msra.mxu1 %v1259_v10 }
 0x576   :  { %1515 = vrot.lane.b32.xlu1 %v3816_v61, %s3618_s4 }
 0x57a   :  { %1519 = vrot.lane.b32.xlu1 %v3838_v7, %s3618_s4 }
 0x57e   :  { %1523 = vrot.lane.b32.xlu1 %v3860_v17, %s3618_s4 }
 0x57f   :  { %248 = vperm.xlu0 %3305, %v234_v22  }
 0x582   :  { %1527 = vrot.lane.b32.xlu1 %v3880_v27, %s3618_s4 }
 0x583   :  { %1517 = vrot.lane.b32.xlu0 %v3812_v60, %s3618_s4 }
 0x586   :  { %1809 = vrot.lane.b32.xlu1 %v3812_v60, %s3619_s26 }
 0x587   :  { %1521 = vrot.lane.b32.xlu0 %v3842_v8, %s3618_s4 }
 0x58a   :  { %1815 = vrot.lane.b32.xlu1 %v3860_v17, %s3619_s26 }
 0x58b   :  { %1525 = vrot.lane.b32.xlu0 %v3864_v18, %s3618_s4 }
 0x58e   :  { %1817 = vrot.lane.b32.xlu1 %v3864_v18, %s3619_s26 }
 0x58f   :  { %1529 = vrot.lane.b32.xlu0 %v3884_v28, %s3618_s4 }
 0x592   :  { %1821 = vrot.lane.b32.xlu1 %v3884_v28, %s3619_s26 }
 0x593   :  { %1807 = vrot.lane.b32.xlu0 %v3816_v61, %s3619_s26 }
 0x596   :  { %2078 = vrot.lane.b32.xlu1 %v3816_v61, %s3620_s27 }
 0x597   :  { %1811 = vrot.lane.b32.xlu0 %v3838_v7, %s3619_s26 }
 0x59a   :  { %2080 = vrot.lane.b32.xlu1 %v3812_v60, %s3620_s27 }
 0x59b   :  { %1813 = vrot.lane.b32.xlu0 %v3842_v8, %s3619_s26 }
 0x59f   :  { %1819 = vrot.lane.b32.xlu0 %v3880_v27, %s3619_s26 }
 0x5a3   :  { %253 = vperm.xlu0 %3305, %v235_v34  }
 0x5ad   :  { %v1177_v58 = vpop.xlane.xlu0 %1176 }
 0x5b1   :  { %v1173_v40 = vpop.xlane.xlu0 %1172 }
 0x5b5   :  { %v1185_v42 = vpop.xlane.xlu1 %1184 }
 0x5b6   :  { %v1179_v39 = vpop.xlane.xlu0 %1178 }
 0x5b7   :  { %3394 = vrcp.f32 %v1179_v39 }
 0x5b8   :  { %3396 = vrcp.f32 %v1173_v40 }
 0x5b9   :  { %v1181_v30 = vpop.xlane.xlu1 %1180  ;;  %3398 = vrcp.f32 %v1177_v58 }
 0x5ba   :  { %v1175_v35 = vpop.xlane.xlu0 %1174 }
 0x5bb   :  { %3400 = vrcp.f32 %v1175_v35 }
 0x5bc   :  { %3402 = vrcp.f32 %v1181_v30 }
 0x5bd   :  { %v1187_v20 = vpop.xlane.xlu1 %1186 }
 0x5be   :  { %v1183_v33 = vpop.xlane.xlu0 %1182 }
 0x5bf   :  { %3404 = vrcp.f32 %v1183_v33 }
 0x5c0   :  { %3406 = vrcp.f32 %v1187_v20 }
 0x5c1   :  { %v3395_v25 = vpop.eup %3394  ;;  %3408 = vrcp.f32 %v1185_v42 }
 0x5c2   :  { %v3397_v51 = vpop.eup %3396  ;;  %v1223_v43 = vmul.f32 %v3395_v25, %v4088_v5 }
 0x5c3   :  { %v3399_v12 = vpop.eup %3398  ;;  %v1220_v38 = vmul.f32 %v3397_v51, %v4082_v59 }
 0x5c4   :  { %v1222_v45 = vmul.f32 %v3399_v12, %v4079_v62  ;;  %v1193_v62 = vpop.xlane.xlu1 %1192 }
 0x5c5   :  { %v3401_v29 = vpop.eup %3400 }
 0x5c6   :  { %v1221_v41 = vmul.f32 %v3401_v29, %v4094_v37  ;;  %v3403_v55 = vpop.eup %3402  ;;  %v1237_v49 = vpack.c.bf16 %v1223_v43, %v1222_v45 }
 0x5c7   :  { %v1224_v50 = vmul.f32 %v3403_v55, %v4092_v15 }
 0x5c8   :  { %v1236_v44 = vpack.c.bf16 %v1221_v41, %v1220_v38  ;;  %v1189_v34 = vpop.xlane.xlu1 %1188 }
 0x5c9   :  { %v3405_v19 = vpop.eup %3404 }
 0x5ca   :  { %v3407_v0 = vpop.eup %3406  ;;  %3035 = vmatprep.mubr.bf16.mxu0 %v1236_v44  ;;  %v1225_v63 = vmul.f32 %v3405_v19, %v4100_v36 }
 0x5cb   :  { %3036 = vmatmul.mubr.bf16.vlgmr.msra.gmra.mrb[48].mxu0 %v1237_v49  ;;  %v3409_v10 = vpop.eup %3408  ;;  %v1227_v5 = vmul.f32 %v3407_v0, %v4098_v31 }
 0x5cc   :  { %v1238_v22 = vpack.c.bf16 %v1225_v63, %v1224_v50  ;;  %v1226_v59 = vmul.f32 %v3409_v10, %v4086_v2 }
 0x5ce   :  { %3039 = vmatprep.mubr.bf16.mxu0 %v1238_v22  ;;  %v1239_v37 = vpack.c.bf16 %v1227_v5, %v1226_v59 }
 0x5d3   :  { %3040 = vmatmul.mubr.bf16.gmra.mrb[52].mxu0 %v1239_v37 }
 0x5f2   :  { %v1195_v58 = vpop.xlane.xlu1 %1194 }
 0x5f3   :  { %3410 = vrcp.f32 %v1195_v58 }
 0x5f4   :  { %3412 = vrcp.f32 %v1189_v34 }
 0x5f5   :  { %3414 = vrcp.f32 %v1193_v62 }
 0x5f6   :  { %v1191_v40 = vpop.xlane.xlu0 %1190  ;;  %v1516_v15 = vpop.permute.xlu1 %1515 }
 0x5f7   :  { %3416 = vrcp.f32 %v1191_v40 }
 0x5fa   :  { %v1520_v12 = vpop.permute.xlu1 %1519 }
 0x5fd   :  { %v3411_v36 = vpop.eup %3410 }
 0x5fe   :  { %v249_v42 = vpop.permute.xlu0 %248  ;;  %v3413_v39 = vpop.eup %3412  ;;  %v1231_v2 = vmul.f32 %v3411_v36, %v4114_v32 }
 0x5ff   :  { %v305_v30 = vadd.f32 %v3798_v48, %v249_v42  ;;  %v3415_v31 = vpop.eup %3414  ;;  %v1228_v25 = vmul.f32 %v3413_v39, %v4109_v9  ;;  %v1524_v9 = vpop.permute.xlu1 %1523 }
 0x600   :  { %v1230_v43 = vmul.f32 %v3415_v31, %v4105_v46 }
 0x601   :  { %v3417_v35 = vpop.eup %3416  ;;  %v1514_v20 = vpack.c.bf16 %v305_v30, %v305_v30 }
 0x602   :  { %v1518_v33 = vpop.permute.xlu0 %1517  ;;  %v1229_v51 = vmul.f32 %v3417_v35, %v4117_v52  ;;  %v1241_v48 = vpack.c.bf16 %v1231_v2, %v1230_v43 }
 0x603   :  { %3289 = vmatprep.subr.msk.bf16.mxu0 %vm420_vm1, %v1514_v20  ;;  %v1556_v29 = vsel %vm420_vm1, %v1514_v20, 0  ;;  %v1528_v19 = vpop.permute.xlu1 %1527 }
 0x604   :  { %3070 = vmatpush3.bf16.msra.mxu0 %v1556_v29  ;;  %v1240_v38 = vpack.c.bf16 %v1229_v51, %v1228_v25 }
 0x606   :  { %3043 = vmatprep.mubr.bf16.mxu0 %v1240_v38  ;;  %v1522_v41 = vpop.permute.xlu0 %1521  ;;  %v345_v38 = vld [vmem:[#allocation4 + $0x110] sm:$0xff] }
 0x607   :  { %3044 = vmatmul.mubr.bf16.gmra.mrb[56].mxu0 %v1241_v48  ;;  %v1810_v0 = vpop.permute.xlu1 %1809  ;;  %v343_v48 = vld [vmem:[#allocation4 + $0x100] sm:$0xff] }
 0x608   :  { %v4161_v55 = vpop.f32.mrb[44].mxu0  ;;  %3071 = vmatprep.mubr.msk.bf16.mxu0 %vm395_vm2, %v1516_v15 }
 0x609   :  { %v4164_v32 = vpop.f32.mrb[45].mxu0 }
 0x60a   :  { %v4166_v52 = vpop.f32.mrb[46].mxu0  ;;  %v1526_v45 = vpop.permute.xlu0 %1525 }
 0x60b   :  { %v4168_v44 = vpop.f32.mrb[47].mxu0  ;;  %v1816_v10 = vpop.permute.xlu1 %1815 }
 0x60e   :  { %v1530_v46 = vpop.permute.xlu0 %1529 }
 0x60f   :  { %3072 = vmatmul.mubr.msk.bf16.vlgmr.msra.gmra.mrb[60].mxu0 %vm395_vm2, %v1518_v33  ;;  %v1818_v5 = vpop.permute.xlu1 %1817 }
 0x610   :  { %3075 = vmatprep.mubr.msk.bf16.mxu0 %vm395_vm2, %v1520_v12 }
 0x612   :  { %v1808_v49 = vpop.permute.xlu0 %1807 }
 0x613   :  { %3087 = vmatprep.subr.bf16.mxu0 %v1808_v49  ;;  %v1822_v62 = vpop.permute.xlu1 %1821 }
 0x614   :  { %3088 = vmatpush3.bf16.msra.mxu0 %v1808_v49 }
 0x615   :  { %3089 = vmatprep.subr.bf16.mxu0 %v1810_v0 }
 0x616   :  { %v1812_v50 = vpop.permute.xlu0 %1811 }
 0x617   :  { %3076 = vmatmul.mubr.msk.bf16.gmra.mrb[64].mxu0 %vm395_vm2, %v1522_v41 }
 0x618   :  { %3079 = vmatprep.mubr.msk.bf16.mxu0 %vm395_vm2, %v1524_v9  ;;  %3090 = vmatpush3.bf16.msra.mxu0 %v1810_v0  ;;  %v346_v0 = vld [vmem:[#allocation4 + $0x118] sm:$0xff] }
 0x619   :  { %3091 = vmatprep.subr.bf16.mxu0 %v1812_v50 }
 0x61a   :  { %v1814_v63 = vpop.permute.xlu0 %1813 }
 0x61c   :  { %3092 = vmatpush3.bf16.msra.mxu0 %v1812_v50 }
 0x61d   :  { %3093 = vmatprep.subr.bf16.mxu0 %v1814_v63 }
 0x61e   :  { %v1820_v22 = vpop.permute.xlu0 %1819 }
 0x61f   :  { %3080 = vmatmul.mubr.msk.bf16.gmra.mrb[68].mxu0 %vm395_vm2, %v1526_v45 }
 0x620   :  { %3083 = vmatprep.mubr.msk.bf16.mxu0 %vm395_vm2, %v1528_v19  ;;  %3094 = vmatpush3.bf16.msra.mxu0 %v1814_v63  ;;  %v344_v19 = vld [vmem:[#allocation4 + $0x108] sm:$0xff] }
 0x621   :  { %3095 = vmatprep.subr.bf16.mxu0 %v1816_v10 }
 0x622   :  { %v254_v59 = vpop.permute.xlu0 %253 }
 0x623   :  { %v308_v37 = vadd.f32 %v3802_v54, %v254_v59  ;;  %v350_v59 = vld [vmem:[#allocation4 + $0x138] sm:$0xff] }
 0x624   :  { %3096 = vmatpush3.bf16.msra.mxu0 %v1816_v10 }
 0x625   :  { %3097 = vmatprep.subr.bf16.mxu0 %v1818_v5  ;;  %v4178_v34 = vpack.c.bf16 %v308_v37, %v308_v37 }
 0x627   :  { %3084 = vmatmul.mubr.msk.bf16.gmra.mrb[72].mxu0 %vm395_vm2, %v1530_v46 }
 0x628   :  { %3098 = vmatpush3.bf16.msra.mxu0 %v1818_v5 }
 0x629   :  { %3099 = vmatprep.subr.bf16.mxu0 %v1820_v22 }
 0x62c   :  { %3100 = vmatpush3.bf16.msra.mxu0 %v1820_v22  ;;  %v349_v22 = vld [vmem:[#allocation4 + $0x130] sm:$0xff] }
 0x62d   :  { %3101 = vmatprep.subr.bf16.mxu0 %v1822_v62 }
 0x630   :  { %3102 = vmatpush3.bf16.msra.mxu0 %v1822_v62 }
 0x631   :  { %3291 = vmatprep.subr.msk.bf16.mxu0 %vm420_vm1, %v4178_v34 }
 0x69e   :  { %v4182_v58 = vpop.f32.mrb[48].mxu0 }
 0x69f   :  { %v4184_v40 = vpop.f32.mrb[49].mxu0 }
 0x6a0   :  { %v4186_v15 = vpop.f32.mrb[50].mxu0 }
 0x6a1   :  { %v4190_v42 = vpop.f32.mrb[51].mxu0 }
 0x6a6   :  { %v4194_v39 = vpop.f32.mrb[52].mxu0 }
 0x6a7   :  { %v4196_v30 = vpop.f32.mrb[53].mxu0 }
 0x6a8   :  { %v4198_v31 = vpop.f32.mrb[54].mxu0 }
 0x6a9   :  { %v4202_v20 = vpop.f32.mrb[55].mxu0 }
 0x6da   :  { %v4206_v33 = vpop.f32.mrb[56].mxu0 }
 0x6db   :  { %v4208_v25 = vpop.f32.mrb[57].mxu0 }
 0x6dc   :  { %v4210_v51 = vpop.f32.mrb[58].mxu0 }
 0x6dd   :  { %v4214_v29 = vpop.f32.mrb[59].mxu0 }
 0x6e2   :  { %v3073_v41 = vpop.f32.mrb[60].mxu0 }
 0x6e3   :  { %v4218_v9 = vadd.f32 %v3073_v41, %v345_v38  ;;  %v1592_v45 = vpop.f32.mrb[61].mxu0  ;;  %v347_v38 = vld [vmem:[#allocation4 + $0x120] sm:$0xff] }
 0x6e4   :  { %v4220_v46 = vadd.f32 %v1592_v45, %v343_v48  ;;  %v3074_v49 = vpop.f32.mrb[62].mxu0 }
 0x6e5   :  { %1659 = vmax.xlane.f32.xlu0 %v4218_v9  ;;  %v1595_v50 = vpop.f32.mrb[63].mxu0  ;;  %v4226_v10 = vadd.f32 %v3074_v49, %v346_v0  ;;  %v353_v0 = vld [vmem:[#allocation4 + $0x150] sm:$0xff] }
 0x6e6   :  { %v4223_v63 = vadd.f32 %v1595_v50, %v344_v19  ;;  %1655 = vmax.xlane.f32.xlu1 %v4220_v46  ;;  %v348_v19 = vld [vmem:[#allocation4 + $0x128] sm:$0xff] }
 0x6e9   :  { %1657 = vmax.xlane.f32.xlu0 %v4223_v63 }
 0x6ea   :  { %1661 = vmax.xlane.f32.xlu1 %v4226_v10  ;;  %v3077_v5 = vpop.f32.mrb[64].mxu0 }
 0x6eb   :  { %v4230_v37 = vadd.f32 %v3077_v5, %v349_v22  ;;  %v1608_v62 = vpop.f32.mrb[65].mxu0  ;;  %v354_v5 = vld [vmem:[#allocation4 + $0x158] sm:$0xff] }
 0x6ec   :  { %v3078_v48 = vpop.f32.mrb[66].mxu0  ;;  %v4235_v49 = vadd.f32 %v1608_v62, %v347_v38  ;;  %v352_v38 = vld [vmem:[#allocation4 + $0x148] sm:$0xff] }
 0x6ed   :  { %v4232_v41 = vadd.f32 %v3078_v48, %v350_v59  ;;  %1667 = vmax.xlane.f32.xlu0 %v4230_v37  ;;  %v1611_v45 = vpop.f32.mrb[67].mxu0  ;;  %v351_v48 = vld [vmem:[#allocation4 + $0x140] sm:$0xff] }
 0x6ee   :  { %v4238_v50 = vadd.f32 %v1611_v45, %v348_v19  ;;  %v357_v45 = vld [vmem:[#allocation4 + $0x170] sm:$0xff] }
 0x6ef   :  { %1669 = vmax.xlane.f32.xlu1 %v4232_v41 }
 0x6f1   :  { %1663 = vmax.xlane.f32.xlu0 %v4235_v49 }
 0x6f2   :  { %v3081_v22 = vpop.f32.mrb[68].mxu0 }
 0x6f3   :  { %v4241_v12 = vadd.f32 %v3081_v22, %v353_v0  ;;  %1665 = vmax.xlane.f32.xlu1 %v4238_v50  ;;  %v1624_v59 = vpop.f32.mrb[69].mxu0  ;;  %v358_v22 = vld [vmem:[#allocation4 + $0x178] sm:$0xff] }
 0x6f4   :  { %v3082_v43 = vpop.f32.mrb[70].mxu0  ;;  %v4247_v2 = vadd.f32 %v1624_v59, %v351_v48  ;;  %v356_v48 = vld [vmem:[#allocation4 + $0x168] sm:$0xff] }
 0x6f5   :  { %v4244_v35 = vadd.f32 %v3082_v43, %v354_v5  ;;  %1675 = vmax.xlane.f32.xlu0 %v4241_v12  ;;  %v1627_v62 = vpop.f32.mrb[71].mxu0  ;;  %v355_v5 = vld [vmem:[#allocation4 + $0x160] sm:$0xff] }
 0x6f6   :  { %v4250_v19 = vadd.f32 %v1627_v62, %v352_v38 }
 0x6f7   :  { %1677 = vmax.xlane.f32.xlu1 %v4244_v35 }
 0x6f9   :  { %1671 = vmax.xlane.f32.xlu0 %v4247_v2 }
 0x6fa   :  { %v3085_v0 = vpop.f32.mrb[72].mxu0 }
 0x6fb   :  { %v4253_v36 = vadd.f32 %v3085_v0, %v357_v45  ;;  %1673 = vmax.xlane.f32.xlu1 %v4250_v19  ;;  %v1640_v43 = vpop.f32.mrb[73].mxu0 }
 0x6fc   :  { %v3086_v54 = vpop.f32.mrb[74].mxu0  ;;  %v4259_v24 = vadd.f32 %v1640_v43, %v355_v5 }
 0x6fd   :  { %v4256_v26 = vadd.f32 %v3086_v54, %v358_v22  ;;  %1683 = vmax.xlane.f32.xlu0 %v4253_v36  ;;  %v1643_v59 = vpop.f32.mrb[75].mxu0  ;;  %v4270_v54 = vpop.permute.xlu1 %2078 }
 0x6fe   :  { %v4262_v62 = vadd.f32 %v1643_v59, %v356_v48 }
 0x6ff   :  { %1685 = vmax.xlane.f32.xlu1 %v4256_v26 }
 0x701   :  { %1679 = vmax.xlane.f32.xlu0 %v4259_v24  ;;  %v4272_v38 = vpop.permute.xlu1 %2080 }
 0x703   :  { %1681 = vmax.xlane.f32.xlu1 %v4262_v62 }
 0x714   :  { %2084 = vrot.lane.b32.xlu1 %v3842_v8, %s3620_s27 }
 0x717   :  { %2082 = vrot.lane.b32.xlu0 %v3838_v7, %s3620_s27 }
 0x772   :  { %v1660_v45 = vpop.xlane.xlu0 %1659 }
 0x773   :  { %v1689_v0 = vsub.f32 %v4218_v9, %v1660_v45  ;;  %v1656_v22 = vpop.xlane.xlu1 %1655 }
 0x774   :  { %v1687_v43 = vsub.f32 %v4220_v46, %v1656_v22 }
 0x775   :  { %v1707_v5 = vmul.f32 1.442695, %v1689_v0 }
 0x776   :  { %v1658_v59 = vpop.xlane.xlu0 %1657  ;;  %v1703_v48 = vmul.f32 1.442695, %v1687_v43 }
 0x777   :  { %3418 = vpow2.f32 %v1707_v5  ;;  %v1662_v21 = vpop.xlane.xlu1 %1661  ;;  %v1688_v16 = vsub.f32 %v4223_v63, %v1658_v59 }
 0x778   :  { %v1690_v23 = vsub.f32 %v4226_v10, %v1662_v21  ;;  %3420 = vpow2.f32 %v1703_v48 }
 0x779   :  { %v1705_v9 = vmul.f32 1.442695, %v1688_v16 }
 0x77a   :  { %v1709_v14 = vmul.f32 1.442695, %v1690_v23  ;;  %v1668_v11 = vpop.xlane.xlu0 %1667 }
 0x77b   :  { %v1693_v13 = vsub.f32 %v4230_v37, %v1668_v11 }
 0x77c   :  { %v1670_v6 = vpop.xlane.xlu1 %1669  ;;  %3422 = vpow2.f32 %v1709_v14 }
 0x77d   :  { %v1715_v4 = vmul.f32 1.442695, %v1693_v13  ;;  %v1694_v46 = vsub.f32 %v4232_v41, %v1670_v6 }
 0x77e   :  { %v1664_v45 = vpop.xlane.xlu0 %1663 }
 0x77f   :  { %3424 = vpow2.f32 %v1715_v4  ;;  %v1691_v0 = vsub.f32 %v4235_v49, %v1664_v45  ;;  %v1717_v63 = vmul.f32 1.442695, %v1694_v46 }
 0x780   :  { %v1666_v22 = vpop.xlane.xlu1 %1665  ;;  %3426 = vpow2.f32 %v1705_v9 }
 0x781   :  { %v4281_v43 = vpop.eup %3418  ;;  %v1711_v21 = vmul.f32 1.442695, %v1691_v0  ;;  %v1692_v23 = vsub.f32 %v4238_v50, %v1666_v22 }
 0x782   :  { %1739 = vadd.xlane.f32.xlu1 %v4281_v43  ;;  %v1676_v11 = vpop.xlane.xlu0 %1675  ;;  %v4286_v16 = vpop.eup %3420 }
 0x783   :  { %3428 = vpow2.f32 %v1711_v21  ;;  %v1713_v13 = vmul.f32 1.442695, %v1692_v23  ;;  %v1697_v14 = vsub.f32 %v4241_v12, %v1676_v11 }
 0x784   :  { %v1678_v6 = vpop.xlane.xlu1 %1677  ;;  %3430 = vpow2.f32 %v1717_v63 }
 0x785   :  { %3432 = vpow2.f32 %v1713_v13  ;;  %v1723_v10 = vmul.f32 1.442695, %v1697_v14  ;;  %v1698_v12 = vsub.f32 %v4244_v35, %v1678_v6 }
 0x786   :  { %1735 = vadd.xlane.f32.xlu1 %v4286_v16  ;;  %v1672_v4 = vpop.xlane.xlu0 %1671  ;;  %v4290_v41 = vpop.eup %3422 }
 0x787   :  { %v1695_v37 = vsub.f32 %v4247_v2, %v1672_v4  ;;  %3434 = vpow2.f32 %v1723_v10 }
 0x788   :  { %v1674_v49 = vpop.xlane.xlu1 %1673 }
 0x789   :  { %v4292_v50 = vpop.eup %3424  ;;  %v1696_v5 = vsub.f32 %v4250_v19, %v1674_v49  ;;  %v1719_v48 = vmul.f32 1.442695, %v1695_v37  ;;  %v1725_v19 = vmul.f32 1.442695, %v1698_v12 }
 0x78a   :  { %1741 = vadd.xlane.f32.xlu1 %v4290_v41  ;;  %1747 = vadd.xlane.f32.xlu0 %v4292_v50  ;;  %v1684_v59 = vpop.xlane.xlu0 %1683  ;;  %v4299_v2 = vpop.eup %3426 }
 0x78b   :  { %v1721_v9 = vmul.f32 1.442695, %v1696_v5  ;;  %v1701_v46 = vsub.f32 %v4253_v36, %v1684_v59  ;;  %v340_v59 = vld [vmem:[#allocation4 + $0xe8] sm:$0xff] }
 0x78c   :  { %v1686_v45 = vpop.xlane.xlu1 %1685 }
 0x78d   :  { %v4301_v0 = vpop.eup %3428  ;;  %3436 = vpow2.f32 %v1721_v9  ;;  %v1731_v22 = vmul.f32 1.442695, %v1701_v46  ;;  %v1702_v21 = vsub.f32 %v4256_v26, %v1686_v45  ;;  %v339_v9 = vld [vmem:[#allocation4 + $0xe0] sm:$0xff]  ;;  %v341_v45 = vld [vmem:[#allocation4 + $0xf0] sm:$0xff] }
 0x78e   :  { %1737 = vadd.xlane.f32.xlu1 %v4299_v2  ;;  %1743 = vadd.xlane.f32.xlu0 %v4301_v0  ;;  %v1680_v35 = vpop.xlane.xlu0 %1679  ;;  %3438 = vpow2.f32 %v1719_v48  ;;  %v4307_v63 = vpop.eup %3430  ;;  %v4343_v48 = vadd.f32 %v4168_v44, %v340_v59  ;;  %v4347_v46 = vadd.f32 %v4164_v32, %v339_v9 }
 0x78f   :  { %v1699_v23 = vsub.f32 %v4259_v24, %v1680_v35  ;;  %v4309_v11 = vpop.eup %3432  ;;  %3440 = vpow2.f32 %v1731_v22  ;;  %v1733_v14 = vmul.f32 1.442695, %v1702_v21  ;;  %v4351_v22 = vadd.f32 %v4161_v55, %v341_v45  ;;  %v342_v35 = vld [vmem:[#allocation4 + $0xf8] sm:$0xff] }
 0x790   :  { %v1682_v36 = vpop.xlane.xlu1 %1681  ;;  %3442 = vpow2.f32 %v1725_v19  ;;  %v4355_v19 = vadd.f32 %v4166_v52, %v342_v35 }
 0x791   :  { %v1727_v13 = vmul.f32 1.442695, %v1699_v23  ;;  %v1700_v6 = vsub.f32 %v4262_v62, %v1682_v36  ;;  %v4314_v4 = vpop.eup %3434 }
 0x792   :  { %1745 = vadd.xlane.f32.xlu1 %v4309_v11  ;;  %1749 = vadd.xlane.f32.xlu0 %v4307_v63  ;;  %v4364_v21 = vpop.permute.xlu0 %2082 }
 0x793   :  { %3444 = vpow2.f32 %v1727_v13  ;;  %v1729_v26 = vmul.f32 1.442695, %v1700_v6 }
 0x794   :  { %3446 = vpow2.f32 %v1733_v14  ;;  %v4362_v32 = vpop.permute.xlu1 %2084 }
 0x795   :  { %3448 = vpow2.f32 %v1729_v26 }
 0x796   :  { %1755 = vadd.xlane.f32.xlu0 %v4314_v4 }
 0x797   :  { %v4317_v24 = vpop.eup %3436 }
 0x798   :  { %1753 = vadd.xlane.f32.xlu1 %v4317_v24  ;;  %v4320_v10 = vpop.eup %3438 }
 0x799   :  { %v4323_v37 = vpop.eup %3440 }
 0x79a   :  { %1751 = vadd.xlane.f32.xlu0 %v4320_v10  ;;  %v4326_v62 = vpop.eup %3442 }
 0x79c   :  { %1763 = vadd.xlane.f32.xlu1 %v4323_v37 }
 0x79d   :  { %v4329_v49 = vpop.eup %3444 }
 0x79e   :  { %1757 = vadd.xlane.f32.xlu0 %v4326_v62  ;;  %v4332_v5 = vpop.eup %3446 }
 0x79f   :  { %v4335_v12 = vpop.eup %3448 }
 0x7a0   :  { %1759 = vadd.xlane.f32.xlu1 %v4329_v49 }
 0x7a2   :  { %1765 = vadd.xlane.f32.xlu0 %v4332_v5 }
 0x7a6   :  { %1761 = vadd.xlane.f32.xlu0 %v4335_v12 }
 0x7b1   :  { %2088 = vrot.lane.b32.xlu1 %v3864_v18, %s3620_s27 }
 0x7bc   :  { %2086 = vrot.lane.b32.xlu0 %v3860_v17, %s3620_s27 }
 0x7d5   :  { %1118 = vmax.xlane.f32.xlu1 %v4343_v48 }
 0x7db   :  { %1116 = vmax.xlane.f32.xlu0 %v4347_v46 }
 0x7df   :  { %1120 = vmax.xlane.f32.xlu0 %v4351_v22 }
 0x7e3   :  { %1122 = vmax.xlane.f32.xlu0 %v4355_v19 }
 0x7e6   :  { %2090 = vrot.lane.b32.xlu1 %v3880_v27, %s3620_s27 }
 0x7f9   :  { %2092 = vrot.lane.b32.xlu0 %v3884_v28, %s3620_s27 }
 0x80f   :  { %v1740_v44 = vpop.xlane.xlu1 %1739 }
 0x813   :  { %v1736_v55 = vpop.xlane.xlu1 %1735 }
 0x817   :  { %v1742_v23 = vpop.xlane.xlu1 %1741  ;;  %v1748_v36 = vpop.xlane.xlu0 %1747 }
 0x818   :  { %3450 = vrcp.f32 %v1742_v23 }
 0x819   :  { %3452 = vrcp.f32 %v1736_v55 }
 0x81a   :  { %3454 = vrcp.f32 %v1740_v44 }
 0x81b   :  { %v1738_v52 = vpop.xlane.xlu1 %1737  ;;  %v1744_v13 = vpop.xlane.xlu0 %1743 }
 0x81c   :  { %3456 = vrcp.f32 %v1738_v52 }
 0x81d   :  { %3458 = vrcp.f32 %v1744_v13 }
 0x81f   :  { %v1746_v14 = vpop.xlane.xlu1 %1745  ;;  %v1750_v6 = vpop.xlane.xlu0 %1749 }
 0x820   :  { %3460 = vrcp.f32 %v1746_v14 }
 0x821   :  { %3462 = vrcp.f32 %v1750_v6 }
 0x822   :  { %v3451_v26 = vpop.eup %3450  ;;  %3464 = vrcp.f32 %v1748_v36 }
 0x823   :  { %v1756_v59 = vpop.xlane.xlu0 %1755  ;;  %v3453_v9 = vpop.eup %3452  ;;  %v1786_v3 = vmul.f32 %v3451_v26, %v4290_v41 }
 0x824   :  { %v3455_v45 = vpop.eup %3454  ;;  %v1783_v44 = vmul.f32 %v3453_v9, %v4286_v16  ;;  %v2119_v16 = vsel %vm420_vm1, %v4178_v34, 0 }
 0x825   :  { %v1754_v35 = vpop.xlane.xlu1 %1753  ;;  %v1785_v13 = vmul.f32 %v3455_v45, %v4281_v43 }
 0x826   :  { %v3457_v1 = vpop.eup %3456  ;;  %3466 = vrcp.f32 %v1754_v35 }
 0x827   :  { %v1752_v55 = vpop.xlane.xlu0 %1751  ;;  %v1784_v23 = vmul.f32 %v3457_v1, %v4299_v2  ;;  %v3459_v52 = vpop.eup %3458  ;;  %v1800_v57 = vpack.c.bf16 %v1786_v3, %v1785_v13 }
 0x828   :  { %3468 = vrcp.f32 %v1752_v55  ;;  %v1787_v41 = vmul.f32 %v3459_v52, %v4301_v0 }
 0x829   :  { %v1764_v14 = vpop.xlane.xlu1 %1763  ;;  %v1799_v6 = vpack.c.bf16 %v1784_v23, %v1783_v44  ;;  %3470 = vrcp.f32 %v1756_v59 }
 0x82a   :  { %v3461_v36 = vpop.eup %3460 }
 0x82b   :  { %v3463_v53 = vpop.eup %3462  ;;  %3103 = vmatprep.mubr.bf16.mxu0 %v1799_v6  ;;  %v1758_v56 = vpop.xlane.xlu0 %1757  ;;  %v1788_v26 = vmul.f32 %v3461_v36, %v4309_v11 }
 0x82c   :  { %3472 = vrcp.f32 %v1758_v56  ;;  %3104 = vmatmul.mubr.bf16.vlgmr.msra.gmra.mrb[76].mxu0 %v1800_v57  ;;  %v3465_v1 = vpop.eup %3464  ;;  %v1790_v2 = vmul.f32 %v3463_v53, %v4307_v63 }
 0x82d   :  { %3138 = vmatpush3.bf16.msra.mxu0 %v2119_v16  ;;  %v1801_v43 = vpack.c.bf16 %v1788_v26, %v1787_v41  ;;  %v1760_v9 = vpop.xlane.xlu1 %1759  ;;  %v1789_v45 = vmul.f32 %v3465_v1, %v4292_v50 }
 0x82f   :  { %3107 = vmatprep.mubr.bf16.mxu0 %v1801_v43  ;;  %v1766_v3 = vpop.xlane.xlu0 %1765  ;;  %v1802_v11 = vpack.c.bf16 %v1790_v2, %v1789_v45 }
 0x830   :  { %v3467_v59 = vpop.eup %3466  ;;  %3474 = vrcp.f32 %v1766_v3 }
 0x831   :  { %3476 = vrcp.f32 %v1760_v9  ;;  %v1792_v57 = vmul.f32 %v3467_v59, %v4317_v24 }
 0x832   :  { %v3469_v0 = vpop.eup %3468  ;;  %3478 = vrcp.f32 %v1764_v14 }
 0x833   :  { %v1762_v35 = vpop.xlane.xlu0 %1761  ;;  %v1791_v56 = vmul.f32 %v3469_v0, %v4320_v10  ;;  %v3471_v34 = vpop.eup %3470 }
 0x834   :  { %3480 = vrcp.f32 %v1762_v35  ;;  %3108 = vmatmul.mubr.bf16.gmra.mrb[80].mxu0 %v1802_v11  ;;  %v1793_v55 = vmul.f32 %v3471_v34, %v4314_v4 }
 0x835   :  { %v1803_v53 = vpack.c.bf16 %v1792_v57, %v1791_v56 }
 0x836   :  { %v3473_v63 = vpop.eup %3472 }
 0x837   :  { %3111 = vmatprep.mubr.bf16.mxu0 %v1803_v53  ;;  %v1794_v50 = vmul.f32 %v3473_v63, %v4326_v62  ;;  %v2087_v4 = vpop.permute.xlu0 %2086 }
 0x839   :  { %v1804_v44 = vpack.c.bf16 %v1794_v50, %v1793_v55 }
 0x83a   :  { %v3475_v23 = vpop.eup %3474 }
 0x83b   :  { %v3477_v52 = vpop.eup %3476  ;;  %v1798_v10 = vmul.f32 %v3475_v23, %v4332_v5 }
 0x83c   :  { %3112 = vmatmul.mubr.bf16.gmra.mrb[84].mxu0 %v1804_v44  ;;  %v3479_v13 = vpop.eup %3478  ;;  %v1795_v24 = vmul.f32 %v3477_v52, %v4329_v49 }
 0x83d   :  { %v1797_v36 = vmul.f32 %v3479_v13, %v4323_v37  ;;  %v2089_v37 = vpop.permute.xlu1 %2088 }
 0x83e   :  { %v3481_v14 = vpop.eup %3480 }
 0x83f   :  { %v1796_v6 = vmul.f32 %v3481_v14, %v4335_v12  ;;  %v1806_v26 = vpack.c.bf16 %v1798_v10, %v1797_v36 }
 0x841   :  { %v1805_v41 = vpack.c.bf16 %v1796_v6, %v1795_v24 }
 0x843   :  { %3115 = vmatprep.mubr.bf16.mxu0 %v1805_v41 }
 0x844   :  { %3116 = vmatmul.mubr.bf16.gmra.mrb[88].mxu0 %v1806_v26 }
 0x845   :  { %3139 = vmatprep.mubr.msk.bf16.mxu0 %vm395_vm2, %v4270_v54 }
 0x84c   :  { %3140 = vmatmul.mubr.msk.bf16.vlgmr.msra.gmra.mrb[92].mxu0 %vm395_vm2, %v4272_v38 }
 0x84d   :  { %3143 = vmatprep.mubr.msk.bf16.mxu0 %vm395_vm2, %v4364_v21 }
 0x854   :  { %3144 = vmatmul.mubr.msk.bf16.gmra.mrb[96].mxu0 %vm395_vm2, %v4362_v32 }
 0x855   :  { %3147 = vmatprep.mubr.msk.bf16.mxu0 %vm395_vm2, %v2087_v4 }
 0x85c   :  { %3148 = vmatmul.mubr.msk.bf16.gmra.mrb[100].mxu0 %vm395_vm2, %v2089_v37 }
 0x862   :  { %v1119_v62 = vpop.xlane.xlu1 %1118 }
 0x863   :  { %v1137_v49 = vsub.f32 %v4343_v48, %v1119_v62 }
 0x865   :  { %v1166_v5 = vmul.f32 1.442695, %v1137_v49 }
 0x866   :  { %v2091_v54 = vpop.permute.xlu1 %2090 }
 0x867   :  { %3482 = vpow2.f32 %v1166_v5  ;;  %3151 = vmatprep.mubr.msk.bf16.mxu0 %vm395_vm2, %v2091_v54 }
 0x868   :  { %v1117_v38 = vpop.xlane.xlu0 %1116 }
 0x869   :  { %v1136_v12 = vsub.f32 %v4347_v46, %v1117_v38 }
 0x86b   :  { %v1164_v21 = vmul.f32 1.442695, %v1136_v12 }
 0x86c   :  { %v1121_v16 = vpop.xlane.xlu0 %1120 }
 0x86d   :  { %3484 = vpow2.f32 %v1164_v21  ;;  %v1138_v32 = vsub.f32 %v4351_v22, %v1121_v16  ;;  %v376_v22 = vld [vmem:[#allocation2 + $0x8] sm:$0xff]  ;;  %v377_v16 = vld [vmem:[#allocation2 + $0x10] sm:$0xff] }
 0x86e   :  { %v1373_v0 = vpack.c.bf16 %v376_v22, %v376_v22  ;;  %v1936_v22 = vpack.c.bf16 %v377_v16, %v377_v16 }
 0x86f   :  { %v1168_v1 = vmul.f32 1.442695, %v1138_v32 }
 0x870   :  { %v1123_v43 = vpop.xlane.xlu0 %1122  ;;  %3288 = vmatprep.subr.msk.bf16.mxu1 %vm420_vm1, %v1373_v0 }
 0x871   :  { %v3483_v2 = vpop.eup %3482  ;;  %3486 = vpow2.f32 %v1168_v1  ;;  %v1139_v9 = vsub.f32 %v4355_v19, %v1123_v43 }
 0x872   :  { %1198 = vadd.xlane.f32.xlu0 %v3483_v2 }
 0x873   :  { %v1170_v48 = vmul.f32 1.442695, %v1139_v9 }
 0x874   :  { %v2093_v3 = vpop.permute.xlu0 %2092 }
 0x875   :  { %3488 = vpow2.f32 %v1170_v48  ;;  %3152 = vmatmul.mubr.msk.bf16.gmra.mrb[104].mxu0 %vm395_vm2, %v2093_v3 }
 0x877   :  { %v3485_v59 = vpop.eup %3484 }
 0x878   :  { %1196 = vadd.xlane.f32.xlu1 %v3485_v59 }
 0x87b   :  { %v3487_v46 = vpop.eup %3486 }
 0x87c   :  { %1200 = vadd.xlane.f32.xlu1 %v3487_v46 }
 0x87f   :  { %v3489_v45 = vpop.eup %3488 }
 0x880   :  { %1202 = vadd.xlane.f32.xlu0 %v3489_v45 }
 0x88d   :  { %2370 = vrot.lane.b32.xlu1 %v3816_v61, %s3621_s5 }
 0x8ff   :  { %v4403_v19 = vpop.f32.mrb[76].mxu0  ;;  %v1199_v35 = vpop.xlane.xlu0 %1198 }
 0x900   :  { %v4405_v11 = vpop.f32.mrb[77].mxu0  ;;  %3490 = vrcp.f32 %v1199_v35  ;;  %v361_v35 = vld [vmem:[#allocation4 + $0x190] sm:$0xff] }
 0x901   :  { %v4407_v56 = vpop.f32.mrb[78].mxu0 }
 0x902   :  { %v1929_v57 = vpack.c.bf16 %v4407_v56, %v4403_v19  ;;  %v4411_v34 = vpop.f32.mrb[79].mxu0 }
 0x903   :  { %v1928_v53 = vpack.c.bf16 %v4411_v34, %v4405_v11 }
 0x905   :  { %v1197_v61 = vpop.xlane.xlu1 %1196 }
 0x906   :  { %3492 = vrcp.f32 %v1197_v61  ;;  %v362_v61 = vld [vmem:[#allocation4 + $0x198] sm:$0xff] }
 0x907   :  { %v4415_v63 = vpop.f32.mrb[80].mxu0 }
 0x908   :  { %v4417_v55 = vpop.f32.mrb[81].mxu0 }
 0x909   :  { %v4419_v50 = vpop.f32.mrb[82].mxu0  ;;  %v1201_v44 = vpop.xlane.xlu1 %1200 }
 0x90a   :  { %v1931_v23 = vpack.c.bf16 %v4419_v50, %v4415_v63  ;;  %v4423_v52 = vpop.f32.mrb[83].mxu0  ;;  %3494 = vrcp.f32 %v1201_v44  ;;  %v3491_v10 = vpop.eup %3490 }
 0x90b   :  { %v1930_v13 = vpack.c.bf16 %v4423_v52, %v4417_v55  ;;  %v1233_v4 = vmul.f32 %v3491_v10, %v3483_v2  ;;  %v359_v10 = vld [vmem:[#allocation4 + $0x180] sm:$0xff] }
 0x90d   :  { %v1203_v14 = vpop.xlane.xlu0 %1202 }
 0x90e   :  { %3496 = vrcp.f32 %v1203_v14 }
 0x90f   :  { %v4427_v24 = vpop.f32.mrb[84].mxu0 }
 0x910   :  { %v3493_v6 = vpop.eup %3492  ;;  %v4429_v36 = vpop.f32.mrb[85].mxu0 }
 0x911   :  { %v4431_v41 = vpop.f32.mrb[86].mxu0  ;;  %v1232_v26 = vmul.f32 %v3493_v6, %v3485_v59  ;;  %v1399_v59 = vsel %vm420_vm1, %v1373_v0, 0 }
 0x912   :  { %v1933_v37 = vpack.c.bf16 %v4431_v41, %v4427_v24  ;;  %v4435_v62 = vpop.f32.mrb[87].mxu0 }
 0x913   :  { %v1932_v49 = vpack.c.bf16 %v4435_v62, %v4429_v36  ;;  %v1242_v5 = vpack.c.bf16 %v1233_v4, %v1232_v26  ;;  %v360_v4 = vld [vmem:[#allocation4 + $0x188] sm:$0xff] }
 0x914   :  { %v3495_v54 = vpop.eup %3494 }
 0x915   :  { %3047 = vmatprep.mubr.bf16.mxu1 %v1242_v5  ;;  %v1234_v32 = vmul.f32 %v3495_v54, %v3487_v46  ;;  %v4855_v46 = vpack.c.bf16 %v4190_v42, %v4184_v40  ;;  %v1962_v40 = vsel %vm420_vm1, %v1936_v22, 0  ;;  %v4856_v5 = vpack.c.bf16 %v4186_v15, %v4182_v58  ;;  %v365_v54 = vld [vmem:[#allocation4 + $0x1b0] sm:$0xff] }
 0x917   :  { %v4439_v38 = vpop.f32.mrb[88].mxu0 }
 0x918   :  { %v3497_v12 = vpop.eup %3496  ;;  %v4441_v21 = vpop.f32.mrb[89].mxu0 }
 0x919   :  { %v1235_v1 = vmul.f32 %v3497_v12, %v3489_v45  ;;  %v4443_v43 = vpop.f32.mrb[90].mxu0  ;;  %v4470_v12 = vpop.permute.xlu1 %2370 }
 0x91a   :  { %v1935_v2 = vpack.c.bf16 %v4443_v43, %v4439_v38  ;;  %v4447_v9 = vpop.f32.mrb[91].mxu0 }
 0x91b   :  { %v1934_v48 = vpack.c.bf16 %v4447_v9, %v4441_v21  ;;  %v1243_v3 = vpack.c.bf16 %v1235_v1, %v1234_v32  ;;  %v4857_v32 = vpack.c.bf16 %v4202_v20, %v4196_v30  ;;  %v4858_v20 = vpack.c.bf16 %v4198_v31, %v4194_v39  ;;  %v367_v39 = vld [vmem:[#allocation4 + $0x1c0] sm:$0xff] }
 0x91d   :  { %3048 = vmatmul.mubr.bf16.vlgmr.msra.gmra.mrb[36].mxu1 %v1243_v3  ;;  %v366_v3 = vld [vmem:[#allocation4 + $0x1b8] sm:$0xff] }
 0x91e   :  { %3053 = vmatprep.mubr.msk.bf16.mxu1 %vm395_vm2, %v4855_v46  ;;  %3052 = vmatpush3.bf16.msra.mxu1 %v1399_v59  ;;  %v363_v59 = vld [vmem:[#allocation4 + $0x1a0] sm:$0xff] }
 0x91f   :  { %v3141_v45 = vpop.f32.mrb[92].mxu0  ;;  %3290 = vmatprep.subr.msk.bf16.mxu1 %vm420_vm1, %v1936_v22 }
 0x920   :  { %v4457_v44 = vadd.f32 %v3141_v45, %v361_v35  ;;  %v2155_v14 = vpop.f32.mrb[93].mxu0  ;;  %v364_v45 = vld [vmem:[#allocation4 + $0x1a8] sm:$0xff] }
 0x921   :  { %v3142_v6 = vpop.f32.mrb[94].mxu0  ;;  %v4463_v42 = vadd.f32 %v2155_v14, %v359_v10  ;;  %v4859_v10 = vpack.c.bf16 %v4214_v29, %v4208_v25  ;;  %v4860_v25 = vpack.c.bf16 %v4210_v51, %v4206_v33  ;;  %v374_v33 = vld [vmem:[#allocation4 + $0x1f8] sm:$0xff] }
 0x922   :  { %v4459_v26 = vadd.f32 %v3142_v6, %v362_v61  ;;  %v2158_v0 = vpop.f32.mrb[95].mxu0  ;;  %2222 = vmax.xlane.f32.xlu1 %v4457_v44  ;;  %v369_v61 = vld [vmem:[#allocation4 + $0x1d0] sm:$0xff] }
 0x923   :  { %v4472_v16 = vadd.f32 %v2158_v0, %v360_v4  ;;  %v370_v0 = vld [vmem:[#allocation4 + $0x1d8] sm:$0xff] }
 0x924   :  { %2224 = vmax.xlane.f32.xlu0 %v4459_v26 }
 0x925   :  { %3054 = vmatmul.mubr.msk.bf16.vlgmr.msra.gmra.mrb[20].mxu1 %vm395_vm2, %v4856_v5 }
 0x926   :  { %3120 = vmatpush3.bf16.msra.mxu1 %v1962_v40  ;;  %2218 = vmax.xlane.f32.xlu1 %v4463_v42 }
 0x927   :  { %3057 = vmatprep.mubr.msk.bf16.mxu1 %vm395_vm2, %v4857_v32  ;;  %3155 = vmatprep.subr.bf16.mxu1 %v4470_v12  ;;  %v3145_v1 = vpop.f32.mrb[96].mxu0  ;;  %v368_v32 = vld [vmem:[#allocation4 + $0x1c8] sm:$0xff] }
 0x928   :  { %v4480_v58 = vadd.f32 %v3145_v1, %v365_v54  ;;  %v2171_v15 = vpop.f32.mrb[97].mxu0  ;;  %2220 = vmax.xlane.f32.xlu0 %v4472_v16 }
 0x929   :  { %v3146_v22 = vpop.f32.mrb[98].mxu0  ;;  %v4486_v30 = vadd.f32 %v2171_v15, %v363_v59 }
 0x92a   :  { %v4483_v35 = vadd.f32 %v3146_v22, %v366_v3  ;;  %v2174_v46 = vpop.f32.mrb[99].mxu0  ;;  %2230 = vmax.xlane.f32.xlu1 %v4480_v58  ;;  %v373_v3 = vld [vmem:[#allocation4 + $0x1f0] sm:$0xff] }
 0x92b   :  { %v4493_v14 = vadd.f32 %v2174_v46, %v364_v45  ;;  %v371_v46 = vld [vmem:[#allocation4 + $0x1e0] sm:$0xff] }
 0x92c   :  { %2232 = vmax.xlane.f32.xlu0 %v4483_v35 }
 0x92d   :  { %3058 = vmatmul.mubr.msk.bf16.gmra.mrb[24].mxu1 %vm395_vm2, %v4858_v20 }
 0x92e   :  { %2226 = vmax.xlane.f32.xlu1 %v4486_v30  ;;  %3061 = vmatprep.mubr.msk.bf16.mxu1 %vm395_vm2, %v4859_v10  ;;  %v372_v10 = vld [vmem:[#allocation4 + $0x1e8] sm:$0xff] }
 0x92f   :  { %v3149_v6 = vpop.f32.mrb[100].mxu0 }
 0x930   :  { %v4500_v4 = vadd.f32 %v3149_v6, %v369_v61  ;;  %v2187_v40 = vpop.f32.mrb[101].mxu0  ;;  %2228 = vmax.xlane.f32.xlu0 %v4493_v14 }
 0x931   :  { %v3150_v31 = vpop.f32.mrb[102].mxu0  ;;  %v4506_v1 = vadd.f32 %v2187_v40, %v367_v39 }
 0x932   :  { %v4503_v5 = vadd.f32 %v3150_v31, %v370_v0  ;;  %v2190_v54 = vpop.f32.mrb[103].mxu0  ;;  %2238 = vmax.xlane.f32.xlu1 %v4500_v4 }
 0x933   :  { %v4513_v29 = vadd.f32 %v2190_v54, %v368_v32 }
 0x934   :  { %2240 = vmax.xlane.f32.xlu0 %v4503_v5 }
 0x935   :  { %3062 = vmatmul.mubr.msk.bf16.gmra.mrb[28].mxu1 %vm395_vm2, %v4860_v25 }
 0x936   :  { %2234 = vmax.xlane.f32.xlu1 %v4506_v1 }
 0x938   :  { %2236 = vmax.xlane.f32.xlu0 %v4513_v29 }
 0x948   :  { %v3153_v15 = vpop.f32.mrb[104].mxu0 }
 0x949   :  { %v4517_v59 = vadd.f32 %v3153_v15, %v373_v3  ;;  %v2203_v22 = vpop.f32.mrb[105].mxu0 }
 0x94a   :  { %v3154_v45 = vpop.f32.mrb[106].mxu0  ;;  %v4520_v61 = vadd.f32 %v2203_v22, %v371_v46 }
 0x94b   :  { %2246 = vmax.xlane.f32.xlu1 %v4517_v59  ;;  %v2206_v20 = vpop.f32.mrb[107].mxu0  ;;  %v4533_v51 = vadd.f32 %v3154_v45, %v374_v33 }
 0x94e   :  { %2374 = vrot.lane.b32.xlu0 %v3838_v7, %s3621_s5  ;;  %v4536_v7 = vadd.f32 %v2206_v20, %v372_v10 }
 0x94f   :  { %2242 = vmax.xlane.f32.xlu1 %v4520_v61 }
 0x952   :  { %2378 = vrot.lane.b32.xlu0 %v3860_v17, %s3621_s5 }
 0x960   :  { %2372 = vrot.lane.b32.xlu1 %v3812_v60, %s3621_s5 }
 0x964   :  { %2376 = vrot.lane.b32.xlu1 %v3842_v8, %s3621_s5 }
 0x968   :  { %2382 = vrot.lane.b32.xlu1 %v3880_v27, %s3621_s5 }
 0x971   :  { %2248 = vmax.xlane.f32.xlu0 %v4533_v51 }
 0x975   :  { %2244 = vmax.xlane.f32.xlu0 %v4536_v7 }
 0x98b   :  { %2380 = vrot.lane.b32.xlu0 %v3864_v18, %s3621_s5 }
 0x9af   :  { %v2223_v60 = vpop.xlane.xlu1 %2222 }
 0x9b0   :  { %v2252_v17 = vsub.f32 %v4457_v44, %v2223_v60 }
 0x9b1   :  { %v2225_v8 = vpop.xlane.xlu0 %2224 }
 0x9b2   :  { %v2270_v6 = vmul.f32 1.442695, %v2252_v17  ;;  %v2253_v27 = vsub.f32 %v4459_v26, %v2225_v8 }
 0x9b3   :  { %v2219_v0 = vpop.xlane.xlu1 %2218 }
 0x9b4   :  { %3498 = vpow2.f32 %v2270_v6  ;;  %v2250_v40 = vsub.f32 %v4463_v42, %v2219_v0  ;;  %v2272_v54 = vmul.f32 1.442695, %v2253_v27 }
 0x9b5   :  { %v2221_v39 = vpop.xlane.xlu0 %2220 }
 0x9b6   :  { %v2266_v31 = vmul.f32 1.442695, %v2250_v40  ;;  %v2251_v32 = vsub.f32 %v4472_v16, %v2221_v39 }
 0x9b7   :  { %v2231_v25 = vpop.xlane.xlu1 %2230 }
 0x9b8   :  { %3500 = vpow2.f32 %v2266_v31  ;;  %v2256_v18 = vsub.f32 %v4480_v58, %v2231_v25  ;;  %v2268_v44 = vmul.f32 1.442695, %v2251_v32 }
 0x9b9   :  { %v2233_v3 = vpop.xlane.xlu0 %2232  ;;  %3502 = vpow2.f32 %v2272_v54 }
 0x9ba   :  { %v2278_v15 = vmul.f32 1.442695, %v2256_v18  ;;  %v2257_v22 = vsub.f32 %v4483_v35, %v2233_v3 }
 0x9bb   :  { %v2227_v26 = vpop.xlane.xlu1 %2226 }
 0x9bc   :  { %3504 = vpow2.f32 %v2278_v15  ;;  %v2254_v46 = vsub.f32 %v4486_v30, %v2227_v26  ;;  %v2280_v33 = vmul.f32 1.442695, %v2257_v22 }
 0x9bd   :  { %v2229_v42 = vpop.xlane.xlu0 %2228  ;;  %3506 = vpow2.f32 %v2268_v44 }
 0x9be   :  { %v4548_v45 = vpop.eup %3498  ;;  %v2274_v20 = vmul.f32 1.442695, %v2254_v46  ;;  %v2255_v16 = vsub.f32 %v4493_v14, %v2229_v42 }
 0x9bf   :  { %v2239_v10 = vpop.xlane.xlu1 %2238  ;;  %2302 = vadd.xlane.f32.xlu0 %v4548_v45 }
 0x9c0   :  { %3508 = vpow2.f32 %v2274_v20  ;;  %v2276_v58 = vmul.f32 1.442695, %v2255_v16  ;;  %v2260_v60 = vsub.f32 %v4500_v4, %v2239_v10 }
 0x9c1   :  { %v2241_v35 = vpop.xlane.xlu0 %2240  ;;  %3510 = vpow2.f32 %v2280_v33 }
 0x9c2   :  { %v4553_v17 = vpop.eup %3500  ;;  %3512 = vpow2.f32 %v2276_v58  ;;  %v2286_v8 = vmul.f32 1.442695, %v2260_v60  ;;  %v2261_v4 = vsub.f32 %v4503_v5, %v2241_v35 }
 0x9c3   :  { %v2235_v30 = vpop.xlane.xlu1 %2234  ;;  %2298 = vadd.xlane.f32.xlu0 %v4553_v17  ;;  %v4557_v6 = vpop.eup %3502 }
 0x9c4   :  { %v2258_v14 = vsub.f32 %v4506_v1, %v2235_v30  ;;  %3514 = vpow2.f32 %v2286_v8  ;;  %v2288_v1 = vmul.f32 1.442695, %v2261_v4 }
 0x9c5   :  { %v2237_v27 = vpop.xlane.xlu0 %2236 }
 0x9c6   :  { %v4559_v0 = vpop.eup %3504  ;;  %v2259_v40 = vsub.f32 %v4513_v29, %v2237_v27  ;;  %v2282_v39 = vmul.f32 1.442695, %v2258_v14 }
 0x9c7   :  { %2310 = vadd.xlane.f32.xlu1 %v4559_v0  ;;  %2304 = vadd.xlane.f32.xlu0 %v4557_v6  ;;  %v4565_v54 = vpop.eup %3506 }
 0x9c8   :  { %v2284_v31 = vmul.f32 1.442695, %v2259_v40 }
 0x9c9   :  { %v2375_v30 = vpop.permute.xlu0 %2374 }
 0x9ca   :  { %v4567_v32 = vpop.eup %3508  ;;  %3516 = vpow2.f32 %v2284_v31  ;;  %v378_v31 = vld [vmem:[#allocation2 + $0x18] sm:$0xff] }
 0x9cb   :  { %2306 = vadd.xlane.f32.xlu1 %v4567_v32  ;;  %2300 = vadd.xlane.f32.xlu0 %v4565_v54  ;;  %3518 = vpow2.f32 %v2282_v39  ;;  %v4571_v29 = vpop.eup %3510 }
 0x9cc   :  { %v4573_v25 = vpop.eup %3512  ;;  %3520 = vpow2.f32 %v2288_v1 }
 0x9ce   :  { %v4577_v5 = vpop.eup %3514 }
 0x9cf   :  { %2312 = vadd.xlane.f32.xlu1 %v4571_v29  ;;  %2308 = vadd.xlane.f32.xlu0 %v4573_v25 }
 0x9d3   :  { %2318 = vadd.xlane.f32.xlu1 %v4577_v5 }
 0x9d4   :  { %v4580_v18 = vpop.eup %3516 }
 0x9d5   :  { %2316 = vadd.xlane.f32.xlu0 %v4580_v18  ;;  %v4583_v3 = vpop.eup %3518 }
 0x9d6   :  { %v4587_v22 = vpop.eup %3520 }
 0x9d7   :  { %2314 = vadd.xlane.f32.xlu1 %v4583_v3 }
 0x9d8   :  { %v2247_v15 = vpop.xlane.xlu1 %2246 }
 0x9d9   :  { %v2264_v44 = vsub.f32 %v4517_v59, %v2247_v15  ;;  %v2499_v15 = vpack.c.bf16 %v378_v31, %v378_v31 }
 0x9db   :  { %v2294_v26 = vmul.f32 1.442695, %v2264_v44  ;;  %2320 = vadd.xlane.f32.xlu1 %v4587_v22 }
 0x9dc   :  { %v2243_v46 = vpop.xlane.xlu1 %2242 }
 0x9dd   :  { %3522 = vpow2.f32 %v2294_v26  ;;  %v2262_v42 = vsub.f32 %v4520_v61, %v2243_v46  ;;  %v2379_v61 = vpop.permute.xlu0 %2378 }
 0x9df   :  { %v2290_v20 = vmul.f32 1.442695, %v2262_v42 }
 0x9e0   :  { %v2373_v40 = vpop.permute.xlu1 %2372 }
 0x9e1   :  { %3524 = vpow2.f32 %v2290_v20  ;;  %v2525_v20 = vsel %vm420_vm1, %v2499_v15, 0 }
 0x9e4   :  { %v2377_v19 = vpop.permute.xlu1 %2376 }
 0x9e7   :  { %v4591_v16 = vpop.eup %3522 }
 0x9e8   :  { %2326 = vadd.xlane.f32.xlu0 %v4591_v16  ;;  %v2383_v55 = vpop.permute.xlu1 %2382 }
 0x9eb   :  { %v4594_v33 = vpop.eup %3524 }
 0x9ec   :  { %2322 = vadd.xlane.f32.xlu1 %v4594_v33 }
 0x9f0   :  { %v3049_v59 = vpop.f32.mrb[36].mxu1 }
 0x9f1   :  { %v1350_v10 = vpop.f32.mrb[37].mxu1 }
 0x9f2   :  { %v3050_v58 = vpop.f32.mrb[38].mxu1 }
 0x9f3   :  { %v1372_v60 = vpack.c.bf16 %v3050_v58, %v3049_v59  ;;  %v1353_v35 = vpop.f32.mrb[39].mxu1 }
 0x9f4   :  { %v1371_v8 = vpack.c.bf16 %v1353_v35, %v1350_v10 }
 0x9f6   :  { %3065 = vmatprep.mubr.msk.bf16.mxu1 %vm395_vm2, %v1371_v8 }
 0x9f7   :  { %3066 = vmatmul.mubr.msk.bf16.gmra.mrb[32].mxu1 %vm395_vm2, %v1372_v60 }
 0x9f8   :  { %3121 = vmatprep.mubr.msk.bf16.mxu1 %vm395_vm2, %v1928_v53 }
 0x9fe   :  { %v2249_v14 = vpop.xlane.xlu0 %2248 }
 0x9ff   :  { %v2265_v27 = vsub.f32 %v4533_v51, %v2249_v14  ;;  %3122 = vmatmul.mubr.msk.bf16.vlgmr.msra.gmra.mrb[20].mxu1 %vm395_vm2, %v1929_v57 }
 0xa00   :  { %3156 = vmatpush3.bf16.msra.mxu1 %v4470_v12  ;;  %3125 = vmatprep.mubr.msk.bf16.mxu1 %vm395_vm2, %v1930_v13 }
 0xa01   :  { %v2296_v11 = vmul.f32 1.442695, %v2265_v27  ;;  %3157 = vmatprep.subr.bf16.mxu1 %v2373_v40 }
 0xa02   :  { %v2245_v34 = vpop.xlane.xlu0 %2244 }
 0xa03   :  { %3526 = vpow2.f32 %v2296_v11  ;;  %v2263_v53 = vsub.f32 %v4536_v7, %v2245_v34 }
 0xa04   :  { %3158 = vmatpush3.bf16.msra.mxu1 %v2373_v40 }
 0xa05   :  { %v2292_v51 = vmul.f32 1.442695, %v2263_v53  ;;  %3159 = vmatprep.subr.bf16.mxu1 %v2375_v30 }
 0xa06   :  { %v2381_v57 = vpop.permute.xlu0 %2380 }
 0xa07   :  { %3528 = vpow2.f32 %v2292_v51  ;;  %3126 = vmatmul.mubr.msk.bf16.gmra.mrb[24].mxu1 %vm395_vm2, %v1931_v23 }
 0xa08   :  { %3160 = vmatpush3.bf16.msra.mxu1 %v2375_v30  ;;  %3129 = vmatprep.mubr.msk.bf16.mxu1 %vm395_vm2, %v1932_v49 }
 0xa09   :  { %3161 = vmatprep.subr.bf16.mxu1 %v2377_v19 }
 0xa0c   :  { %3162 = vmatpush3.bf16.msra.mxu1 %v2377_v19 }
 0xa0d   :  { %v4622_v56 = vpop.eup %3526  ;;  %3163 = vmatprep.subr.bf16.mxu1 %v2379_v61 }
 0xa0e   :  { %2328 = vadd.xlane.f32.xlu1 %v4622_v56 }
 0xa0f   :  { %3130 = vmatmul.mubr.msk.bf16.gmra.mrb[28].mxu1 %vm395_vm2, %v1933_v37 }
 0xa10   :  { %3164 = vmatpush3.bf16.msra.mxu1 %v2379_v61  ;;  %3133 = vmatprep.mubr.msk.bf16.mxu1 %vm395_vm2, %v1934_v48 }
 0xa11   :  { %v4633_v63 = vpop.eup %3528  ;;  %3165 = vmatprep.subr.bf16.mxu1 %v2381_v57 }
 0xa12   :  { %2324 = vadd.xlane.f32.xlu0 %v4633_v63 }
 0xa14   :  { %3166 = vmatpush3.bf16.msra.mxu1 %v2381_v57 }
 0xa15   :  { %3167 = vmatprep.subr.bf16.mxu1 %v2383_v55 }
 0xa17   :  { %3134 = vmatmul.mubr.msk.bf16.gmra.mrb[32].mxu1 %vm395_vm2, %v1935_v2 }
 0xa18   :  { %3168 = vmatpush3.bf16.msra.mxu1 %v2383_v55 }
 0xa28   :  { %2384 = vrot.lane.b32.xlu0 %v3884_v28, %s3621_s5 }
 0xa4c   :  { %v2303_v50 = vpop.xlane.xlu0 %2302 }
 0xa4d   :  { %3530 = vrcp.f32 %v2303_v50 }
 0xa50   :  { %v2299_v23 = vpop.xlane.xlu0 %2298 }
 0xa54   :  { %v2305_v52 = vpop.xlane.xlu0 %2304  ;;  %v2311_v2 = vpop.xlane.xlu1 %2310 }
 0xa55   :  { %3532 = vrcp.f32 %v2305_v52 }
 0xa56   :  { %3534 = vrcp.f32 %v2299_v23 }
 0xa57   :  { %v3531_v24 = vpop.eup %3530 }
 0xa58   :  { %v2301_v13 = vpop.xlane.xlu0 %2300  ;;  %v2348_v41 = vmul.f32 %v3531_v24, %v4548_v45  ;;  %v2307_v9 = vpop.xlane.xlu1 %2306 }
 0xa59   :  { %3536 = vrcp.f32 %v2301_v13 }
 0xa5c   :  { %v2313_v48 = vpop.xlane.xlu1 %2312  ;;  %v2309_v12 = vpop.xlane.xlu0 %2308 }
 0xa5d   :  { %3538 = vrcp.f32 %v2309_v12 }
 0xa5e   :  { %3540 = vrcp.f32 %v2307_v9 }
 0xa5f   :  { %v3533_v36 = vpop.eup %3532  ;;  %3542 = vrcp.f32 %v2313_v48 }
 0xa60   :  { %v2349_v37 = vmul.f32 %v3533_v36, %v4557_v6  ;;  %v3535_v62 = vpop.eup %3534  ;;  %v2319_v7 = vpop.xlane.xlu1 %2318 }
 0xa61   :  { %v2346_v21 = vmul.f32 %v3535_v62, %v4553_v17 }
 0xa62   :  { %v2363_v49 = vpack.c.bf16 %v2349_v37, %v2348_v41  ;;  %v2317_v4 = vpop.xlane.xlu0 %2316 }
 0xa63   :  { %v3537_v38 = vpop.eup %3536 }
 0xa64   :  { %v2347_v28 = vmul.f32 %v3537_v38, %v4565_v54  ;;  %v2315_v45 = vpop.xlane.xlu1 %2314 }
 0xa65   :  { %3544 = vrcp.f32 %v2315_v45 }
 0xa66   :  { %v2362_v43 = vpack.c.bf16 %v2347_v28, %v2346_v21  ;;  %3546 = vrcp.f32 %v2311_v2 }
 0xa67   :  { %v3539_v17 = vpop.eup %3538  ;;  %3548 = vrcp.f32 %v2317_v4 }
 0xa68   :  { %3171 = vmatprep.mubr.bf16.mxu1 %v2362_v43  ;;  %v2321_v54 = vpop.xlane.xlu1 %2320  ;;  %v3541_v1 = vpop.eup %3540  ;;  %v2351_v26 = vmul.f32 %v3539_v17, %v4573_v25 }
 0xa69   :  { %3550 = vrcp.f32 %v2321_v54  ;;  %v2350_v42 = vmul.f32 %v3541_v1, %v4567_v32  ;;  %v3543_v59 = vpop.eup %3542 }
 0xa6a   :  { %v2353_v30 = vmul.f32 %v3543_v59, %v4571_v29 }
 0xa6b   :  { %v2364_v10 = vpack.c.bf16 %v2351_v26, %v2350_v42  ;;  %v4862_v42 = vld [vmem:[#allocation8_spill] sm:$0xff] }
 0xa6f   :  { %v3545_v58 = vpop.eup %3544 }
 0xa70   :  { %v3547_v60 = vpop.eup %3546  ;;  %v2354_v32 = vmul.f32 %v3545_v58, %v4583_v3 }
 0xa71   :  { %v3549_v25 = vpop.eup %3548  ;;  %v2352_v8 = vmul.f32 %v3547_v60, %v4559_v0 }
 0xa72   :  { %v2355_v61 = vmul.f32 %v3549_v25, %v4580_v18 }
 0xa73   :  { %v2365_v14 = vpack.c.bf16 %v2353_v30, %v2352_v8  ;;  %v3551_v27 = vpop.eup %3550  ;;  %v4864_v30 = vld [vmem:[#allocation12_spill] sm:$0xff]  ;;  %v4865_v8 = vld [vmem:[#allocation11_spill] sm:$0xff] }
 0xa74   :  { %v2366_v40 = vpack.c.bf16 %v2355_v61, %v2354_v32  ;;  %v2357_v51 = vmul.f32 %v3551_v27, %v4587_v22  ;;  %v4866_v61 = vld [vmem:[#allocation13_spill] sm:$0xff] }
 0xa75   :  { %v2327_v39 = vpop.xlane.xlu0 %2326 }
 0xa79   :  { %v2323_v46 = vpop.xlane.xlu1 %2322 }
 0xa9b   :  { %v2329_v35 = vpop.xlane.xlu1 %2328 }
 0xa9f   :  { %v2325_v6 = vpop.xlane.xlu0 %2324 }
 0xaa0   :  { %3552 = vrcp.f32 %v2325_v6 }
 0xaa1   :  { %3554 = vrcp.f32 %v2319_v7 }
 0xaa2   :  { %3556 = vrcp.f32 %v2323_v46  ;;  %v4861_v46 = vld [vmem:[#allocation9_spill] sm:$0xff] }
 0xaa3   :  { %v2385_v44 = vpop.permute.xlu0 %2384  ;;  %3558 = vrcp.f32 %v2329_v35 }
 0xaa4   :  { %3169 = vmatprep.subr.bf16.mxu1 %v2385_v44  ;;  %3560 = vrcp.f32 %v2327_v39  ;;  %v2690_v39 = vld [vmem:[%s4822_s7] ss:$0 sm:$0xff] }
 0xaa5   :  { %3170 = vmatpush3.bf16.msra.mxu1 %v2385_v44 }
 0xaa6   :  { %3292 = vmatprep.subr.msk.bf16.mxu1 %vm420_vm1, %v2499_v15 }
 0xaa8   :  { %3172 = vmatmul.mubr.bf16.vlgmr.msra.gmra.mrb[40].mxu1 %v2363_v49 }
 0xaa9   :  { %3175 = vmatprep.mubr.bf16.mxu1 %v2364_v10  ;;  %3188 = vmatpush3.bf16.msra.mxu1 %v2525_v20 }
 0xaaa   :  { %v3553_v11 = vpop.eup %3552 }
 0xaab   :  { %v3555_v34 = vpop.eup %3554  ;;  %v2359_v29 = vmul.f32 %v3553_v11, %v4633_v63 }
 0xaac   :  { %v3557_v53 = vpop.eup %3556  ;;  %v2356_v3 = vmul.f32 %v3555_v34, %v4577_v5 }
 0xaad   :  { %v2358_v0 = vmul.f32 %v3557_v53, %v4594_v33  ;;  %v3559_v57 = vpop.eup %3558 }
 0xaae   :  { %v2367_v19 = vpack.c.bf16 %v2357_v51, %v2356_v3  ;;  %v3561_v55 = vpop.eup %3560  ;;  %v2361_v50 = vmul.f32 %v3559_v57, %v4622_v56  ;;  %v4868_v3 = vld [vmem:[#allocation16_spill] sm:$0xff]  ;;  %v4870_v57 = vld [vmem:[#allocation17_spill] sm:$0xff] }
 0xaaf   :  { %v2368_v18 = vpack.c.bf16 %v2359_v29, %v2358_v0  ;;  %v2360_v23 = vmul.f32 %v3561_v55, %v4591_v16 }
 0xab0   :  { %3176 = vmatmul.mubr.bf16.gmra.mrb[44].mxu1 %v2365_v14  ;;  %v4867_v14 = vld [vmem:[#allocation14_spill] sm:$0xff] }
 0xab1   :  { %3179 = vmatprep.mubr.bf16.mxu1 %v2366_v40  ;;  %v2369_v52 = vpack.c.bf16 %v2361_v50, %v2360_v23 }
 0xab8   :  { %3180 = vmatmul.mubr.bf16.gmra.mrb[48].mxu1 %v2367_v19  ;;  %v4869_v19 = vld [vmem:[#allocation15_spill] sm:$0xff] }
 0xab9   :  { %3183 = vmatprep.mubr.bf16.mxu1 %v2368_v18  ;;  %v4871_v18 = vld [vmem:[#allocation18_spill] sm:$0xff] }
 0xac0   :  { %3184 = vmatmul.mubr.bf16.gmra.mrb[52].mxu1 %v2369_v52 }
 0xb7b   :  { %v3173_v13 = vpop.f32.mrb[40].mxu1 }
 0xb7c   :  { %v2428_v22 = vpop.f32.mrb[41].mxu1 }
 0xb7d   :  { %v3174_v24 = vpop.f32.mrb[42].mxu1 }
 0xb7e   :  { %v2492_v63 = vpack.c.bf16 %v3174_v24, %v3173_v13  ;;  %v2431_v36 = vpop.f32.mrb[43].mxu1 }
 0xb7f   :  { %v2491_v5 = vpack.c.bf16 %v2431_v36, %v2428_v22 }
 0xb81   :  { %3189 = vmatprep.mubr.msk.bf16.mxu1 %vm395_vm2, %v2491_v5  ;;  %v4873_v5 = vld [vmem:[#allocation19_spill] sm:$0xff] }
 0xb82   :  { %3190 = vmatmul.mubr.msk.bf16.vlgmr.msra.gmra.mrb[20].mxu1 %vm395_vm2, %v2492_v63  ;;  %v4872_v63 = vld [vmem:[#allocation20_spill] sm:$0xff] }
 0xb83   :  { %v3177_v33 = vpop.f32.mrb[44].mxu1 }
 0xb84   :  { %v2444_v41 = vpop.f32.mrb[45].mxu1 }
 0xb85   :  { %v3178_v37 = vpop.f32.mrb[46].mxu1 }
 0xb86   :  { %v2494_v62 = vpack.c.bf16 %v3178_v37, %v3177_v33  ;;  %v2447_v49 = vpop.f32.mrb[47].mxu1  ;;  %v4874_v33 = vld [vmem:[#allocation21_spill] sm:$0xff] }
 0xb87   :  { %v2493_v56 = vpack.c.bf16 %v2447_v49, %v2444_v41  ;;  %v4875_v41 = vld [vmem:[#allocation22_spill] sm:$0xff] }
 0xb89   :  { %3193 = vmatprep.mubr.msk.bf16.mxu1 %vm395_vm2, %v2493_v56 }
 0xb8a   :  { %3194 = vmatmul.mubr.msk.bf16.gmra.mrb[24].mxu1 %vm395_vm2, %v2494_v62 }
 0xb8b   :  { %v3181_v16 = vpop.f32.mrb[48].mxu1 }
 0xb8c   :  { %v2460_v38 = vpop.f32.mrb[49].mxu1 }
 0xb8d   :  { %v3182_v21 = vpop.f32.mrb[50].mxu1 }
 0xb8e   :  { %v2496_v28 = vpack.c.bf16 %v3182_v21, %v3181_v16  ;;  %v2463_v43 = vpop.f32.mrb[51].mxu1 }
 0xb8f   :  { %v2495_v2 = vpack.c.bf16 %v2463_v43, %v2460_v38 }
 0xb91   :  { %3197 = vmatprep.mubr.msk.bf16.mxu1 %vm395_vm2, %v2495_v2 }
 0xb92   :  { %3198 = vmatmul.mubr.msk.bf16.gmra.mrb[28].mxu1 %vm395_vm2, %v2496_v28 }
 0xb93   :  { %v3185_v9 = vpop.f32.mrb[52].mxu1 }
 0xb94   :  { %v2476_v48 = vpop.f32.mrb[53].mxu1 }
 0xb95   :  { %v3186_v12 = vpop.f32.mrb[54].mxu1 }
 0xb96   :  { %v2498_v7 = vpack.c.bf16 %v3186_v12, %v3185_v9  ;;  %v2479_v4 = vpop.f32.mrb[55].mxu1 }
 0xb97   :  { %v2497_v45 = vpack.c.bf16 %v2479_v4, %v2476_v48 }
 0xb99   :  { %3201 = vmatprep.mubr.msk.bf16.mxu1 %vm395_vm2, %v2497_v45 }
 0xb9a   :  { %3202 = vmatmul.mubr.msk.bf16.gmra.mrb[32].mxu1 %vm395_vm2, %v2498_v7 }
 0xc55   :  { %v3191_v6 = vpop.f32.mrb[20].mxu1 }
 0xc56   :  { %v3221_v31 = vadd.f32 %v3191_v6, %v2690_v39  ;;  %v2561_v17 = vpop.f32.mrb[21].mxu1 }
 0xc57   :  { %v3222_v54 = vadd.f32 %v2690_v39, %v2561_v17  ;;  %v3192_v1 = vpop.f32.mrb[22].mxu1 }
 0xc58   :  { %2642 = vst.msk [vmem:[%s4824_s9 + $0x10] sm:$0xff] %vm98_vm0, %v3221_v31  ;;  %v3223_v15 = vadd.f32 %v3192_v1, %v2690_v39  ;;  %v2564_v44 = vpop.f32.mrb[23].mxu1 }
 0xc59   :  { %2659 = vst.msk [vmem:[%s4824_s9 + $0x10] sm:$0xff] %vm2656_vm3, %v3796_v47  ;;  %v3224_v26 = vadd.f32 %v2690_v39, %v2564_v44  ;;  %v4863_v47 = vld [vmem:[#allocation10_spill] sm:$0xff] }
 0xc5a   :  { %2640 = vst.msk [vmem:[%s4824_s9] sm:$0xff] %vm98_vm0, %v3222_v54  ;;  %2643 = vst.msk [vmem:[%s4824_s9 + $0x18] sm:$0xff] %vm98_vm0, %v3223_v15 }
 0xc5b   :  { %2657 = vst.msk [vmem:[%s4824_s9] sm:$0xff] %vm2656_vm3, %v4861_v46  ;;  %2660 = vst.msk [vmem:[%s4824_s9 + $0x18] sm:$0xff] %vm2656_vm3, %v4862_v42 }
 0xc5c   :  { %2641 = vst.msk [vmem:[%s4824_s9 + $0x8] sm:$0xff] %vm98_vm0, %v3224_v26 }
 0xc5d   :  { %2658 = vst.msk [vmem:[%s4824_s9 + $0x8] sm:$0xff] %vm2656_vm3, %v4863_v47  ;;  %v3195_v20 = vpop.f32.mrb[24].mxu1 }
 0xc5e   :  { %v3225_v59 = vadd.f32 %v3195_v20, %v2690_v39  ;;  %v2577_v10 = vpop.f32.mrb[25].mxu1 }
 0xc5f   :  { %v3226_v58 = vadd.f32 %v2690_v39, %v2577_v10  ;;  %v3196_v60 = vpop.f32.mrb[26].mxu1 }
 0xc60   :  { %2646 = vst.msk [vmem:[%s4824_s9 + $0x30] sm:$0xff] %vm98_vm0, %v3225_v59  ;;  %v3227_v25 = vadd.f32 %v3196_v60, %v2690_v39  ;;  %v2580_v35 = vpop.f32.mrb[27].mxu1 }
 0xc61   :  { %2663 = vst.msk [vmem:[%s4824_s9 + $0x30] sm:$0xff] %vm2656_vm3, %v4864_v30  ;;  %v3228_v32 = vadd.f32 %v2690_v39, %v2580_v35 }
 0xc62   :  { %2644 = vst.msk [vmem:[%s4824_s9 + $0x20] sm:$0xff] %vm98_vm0, %v3226_v58  ;;  %2647 = vst.msk [vmem:[%s4824_s9 + $0x38] sm:$0xff] %vm98_vm0, %v3227_v25 }
 0xc63   :  { %2661 = vst.msk [vmem:[%s4824_s9 + $0x20] sm:$0xff] %vm2656_vm3, %v4865_v8  ;;  %2664 = vst.msk [vmem:[%s4824_s9 + $0x38] sm:$0xff] %vm2656_vm3, %v4866_v61 }
 0xc64   :  { %2645 = vst.msk [vmem:[%s4824_s9 + $0x28] sm:$0xff] %vm98_vm0, %v3228_v32 }
 0xc65   :  { %2662 = vst.msk [vmem:[%s4824_s9 + $0x28] sm:$0xff] %vm2656_vm3, %v4867_v14  ;;  %v3199_v27 = vpop.f32.mrb[28].mxu1 }
 0xc66   :  { %v3229_v40 = vadd.f32 %v3199_v27, %v2690_v39  ;;  %v2593_v11 = vpop.f32.mrb[29].mxu1 }
 0xc67   :  { %v3230_v34 = vadd.f32 %v2690_v39, %v2593_v11  ;;  %v3200_v53 = vpop.f32.mrb[30].mxu1 }
 0xc68   :  { %2650 = vst.msk [vmem:[%s4824_s9 + $0x50] sm:$0xff] %vm98_vm0, %v3229_v40  ;;  %v3231_v51 = vadd.f32 %v3200_v53, %v2690_v39  ;;  %v2596_v29 = vpop.f32.mrb[31].mxu1 }
 0xc69   :  { %2667 = vst.msk [vmem:[%s4824_s9 + $0x50] sm:$0xff] %vm2656_vm3, %v4868_v3  ;;  %v3232_v0 = vadd.f32 %v2690_v39, %v2596_v29 }
 0xc6a   :  { %2648 = vst.msk [vmem:[%s4824_s9 + $0x40] sm:$0xff] %vm98_vm0, %v3230_v34  ;;  %2651 = vst.msk [vmem:[%s4824_s9 + $0x58] sm:$0xff] %vm98_vm0, %v3231_v51 }
 0xc6b   :  { %2665 = vst.msk [vmem:[%s4824_s9 + $0x40] sm:$0xff] %vm2656_vm3, %v4869_v19  ;;  %2668 = vst.msk [vmem:[%s4824_s9 + $0x58] sm:$0xff] %vm2656_vm3, %v4870_v57 }
 0xc6c   :  { %2649 = vst.msk [vmem:[%s4824_s9 + $0x48] sm:$0xff] %vm98_vm0, %v3232_v0 }
 0xc6d   :  { %2666 = vst.msk [vmem:[%s4824_s9 + $0x48] sm:$0xff] %vm2656_vm3, %v4871_v18  ;;  %v3203_v55 = vpop.f32.mrb[32].mxu1 }
 0xc6e   :  { %v3233_v50 = vadd.f32 %v3203_v55, %v2690_v39  ;;  %v2609_v23 = vpop.f32.mrb[33].mxu1 }
 0xc6f   :  { %v3234_v52 = vadd.f32 %v2690_v39, %v2609_v23  ;;  %v3204_v13 = vpop.f32.mrb[34].mxu1 }
 0xc70   :  { %2654 = vst.msk [vmem:[%s4824_s9 + $0x70] sm:$0xff] %vm98_vm0, %v3233_v50  ;;  %v3235_v22 = vadd.f32 %v3204_v13, %v2690_v39  ;;  %v2612_v24 = vpop.f32.mrb[35].mxu1 }
 0xc71   :  { %2671 = vst.msk [vmem:[%s4824_s9 + $0x70] sm:$0xff] %vm2656_vm3, %v4872_v63  ;;  %v3236_v36 = vadd.f32 %v2690_v39, %v2612_v24 }
 0xc72   :  { %2652 = vst.msk [vmem:[%s4824_s9 + $0x60] sm:$0xff] %vm98_vm0, %v3234_v52  ;;  %2655 = vst.msk [vmem:[%s4824_s9 + $0x78] sm:$0xff] %vm98_vm0, %v3235_v22 }
 0xc73   :  { %2669 = vst.msk [vmem:[%s4824_s9 + $0x60] sm:$0xff] %vm2656_vm3, %v4873_v5  ;;  %2672 = vst.msk [vmem:[%s4824_s9 + $0x78] sm:$0xff] %vm2656_vm3, %v4874_v33 }
 0xc74   :  { %2653 = vst.msk [vmem:[%s4824_s9 + $0x68] sm:$0xff] %vm98_vm0, %v3236_v36 }
 0xc75   :  { %2670 = vst.msk [vmem:[%s4824_s9 + $0x68] sm:$0xff] %vm2656_vm3, %v4875_v41 }
 0xc76   :  { %2677 = vsyncpa [#allocation3], 1 }
 0xc77   :  { %2678 = vsyncpa [#allocation5], 1 }

</bundles_post_ra>
